<compile_context>
chip_gen: v7x
topology: tpu7x:2x2x1
jax: 0.10.0
libtpu: 0.0.40
codegen_flags: <defaults>
</compile_context>

<pallas_src>
import jax
import jax.numpy as jnp
from jax.experimental import pallas as pl
from jax.experimental.pallas import tpu as pltpu

LANE = 128


# ---------------------------------------------------------------------------
# Pallas kernel (embeddings excluded; encoder + pooler + classifier fused)
# ---------------------------------------------------------------------------

def _layer_norm(x, gamma, beta, eps=1e-12):
    mean = jnp.mean(x, axis=-1, keepdims=True)
    var = jnp.mean((x - mean) ** 2, axis=-1, keepdims=True)
    return (x - mean) * jax.lax.rsqrt(var + eps) * gamma + beta


def fused_bert_kernel(x_ref, bias_ref,
                      wq_ref, bq_ref, wk_ref, bk_ref, wv_ref, bv_ref,
                      wo_ref, bo_ref, g1_ref, b1_ref,
                      w1_ref, bw1_ref, w2_ref, bw2_ref,
                      g2_ref, b2_ref,
                      wp_ref, bp_ref, wc_ref, bc_ref,
                      logits_ref):
    """One batch element per grid step: x_ref is (S, H), logits_ref is (1, C_pad)."""
    S, H = x_ref.shape
    x = x_ref[...]                               # (S, H) f32
    xb = x.astype(jnp.bfloat16)                  # MXU operand dtype (weights already bf16)

    # --- self attention (single head, head_dim = H); separate Q/K/V dots ---
    q = jnp.dot(xb, wq_ref[...], preferred_element_type=jnp.float32) + bq_ref[...]
    k = jnp.dot(xb, wk_ref[...], preferred_element_type=jnp.float32) + bk_ref[...]
    v = jnp.dot(xb, wv_ref[...], preferred_element_type=jnp.float32) + bv_ref[...]

    scale = 1.0 / jnp.sqrt(jnp.float32(H))
    # contraction over d — no explicit K transpose
    scores = jnp.einsum("qd,kd->qk",
                        q.astype(jnp.bfloat16), k.astype(jnp.bfloat16),
                        preferred_element_type=jnp.float32) * scale
    scores = scores + bias_ref[...]              # (1, S) key-mask bias, broadcast over rows
    scores = scores - jnp.max(scores, axis=-1, keepdims=True)
    p = jnp.exp(scores)                          # softmax math stays f32
    p = p * pl.reciprocal(jnp.sum(p, axis=-1, keepdims=True), approx=True)

    ctx = jnp.einsum("qk,kd->qd",
                     p.astype(jnp.bfloat16), v.astype(jnp.bfloat16),
                     preferred_element_type=jnp.float32)
    attn = jnp.dot(ctx.astype(jnp.bfloat16), wo_ref[...],
                   preferred_element_type=jnp.float32) + bo_ref[...]
    h1 = _layer_norm(x + attn, g1_ref[...], b1_ref[...])

    # --- feed forward ---
    ff = jnp.dot(h1.astype(jnp.bfloat16), w1_ref[...],
                 preferred_element_type=jnp.float32) + bw1_ref[...]
    ff = jax.nn.gelu(ff, approximate=True)       # f32 (matches in-file reference)
    ff = jnp.dot(ff.astype(jnp.bfloat16), w2_ref[...],
                 preferred_element_type=jnp.float32) + bw2_ref[...]
    h2 = _layer_norm(h1 + ff, g2_ref[...], b2_ref[...])   # (S, H)

    # --- pooler + classifier on the [CLS] row ---
    cls = h2[0:1, :]                             # (1, H), static slice — no reshape
    pooled = jnp.tanh(jnp.dot(cls.astype(jnp.bfloat16), wp_ref[...],
                              preferred_element_type=jnp.float32) + bp_ref[...])
    logits_ref[...] = (jnp.dot(pooled.astype(jnp.bfloat16), wc_ref[...],
                               preferred_element_type=jnp.float32) + bc_ref[...])


# ---------------------------------------------------------------------------
# Wrapper
# ---------------------------------------------------------------------------

def bert_classifier_forward(input_ids, attention_mask, token_type_ids, params):
    """Mirrors BERTClassifier.forward (dr_rate=None)."""
    B, S = input_ids.shape
    H = params["word_emb"].shape[1]
    C = params["w_cls"].shape[1]

    # ---- embeddings (plain JAX glue: gathers + layernorm) ----
    pos_ids = jnp.arange(S, dtype=jnp.int32)
    emb = (jnp.take(params["word_emb"], input_ids, axis=0)
           + jnp.take(params["type_emb"], token_type_ids, axis=0)
           + jnp.take(params["pos_emb"], pos_ids, axis=0)[None, :, :])
    mean = jnp.mean(emb, axis=-1, keepdims=True)
    var = jnp.mean((emb - mean) ** 2, axis=-1, keepdims=True)
    emb = ((emb - mean) * jax.lax.rsqrt(var + 1e-12)
           * params["emb_ln_g"] + params["emb_ln_b"]).astype(jnp.float32)

    # ---- additive attention-mask bias, hoisted out of the kernel ----
    bias = ((1.0 - attention_mask.astype(jnp.float32)) * (-10000.0)).reshape(B, 1, S)

    # ---- lane-dense classifier output: pad C -> multiple of 128 lanes ----
    c_pad = ((C + LANE - 1) // LANE) * LANE
    w_cls_pad = jnp.zeros((H, c_pad), jnp.float32).at[:, :C].set(params["w_cls"])
    b_cls_pad = jnp.zeros((1, c_pad), jnp.float32).at[:, :C].set(params["b_cls"])

    # ---- bf16 weights for the MXU (biases / LN params stay f32) ----
    bf = lambda a: a.astype(jnp.bfloat16)
    weight_args = [
        bf(params["w_q"]), params["b_q"], bf(params["w_k"]), params["b_k"],
        bf(params["w_v"]), params["b_v"],
        bf(params["w_o"]), params["b_o"], params["ln1_g"], params["ln1_b"],
        bf(params["w_ff1"]), params["b_ff1"], bf(params["w_ff2"]), params["b_ff2"],
        params["ln2_g"], params["ln2_b"],
        bf(params["w_pool"]), params["b_pool"], bf(w_cls_pad), b_cls_pad,
    ]

    def resident(a):  # full-array block, constant index map -> stays in VMEM across grid
        return pl.BlockSpec(a.shape, lambda b, _nd=a.ndim: (0,) * _nd)

    in_specs = ([pl.BlockSpec((None, S, H), lambda b: (b, 0, 0)),
                 pl.BlockSpec((None, 1, S), lambda b: (b, 0, 0))]
                + [resident(a) for a in weight_args])

    logits_pad = pl.pallas_call(
        fused_bert_kernel,
        grid=(B,),
        in_specs=in_specs,
        out_specs=pl.BlockSpec((None, 1, c_pad), lambda b: (b, 0, 0)),
        out_shape=jax.ShapeDtypeStruct((B, 1, c_pad), jnp.float32),
        compiler_params=pltpu.CompilerParams(
            dimension_semantics=("parallel",),
            vmem_limit_bytes=32 * 1024 * 1024),
    )(emb, bias, *weight_args)

    return logits_pad[:, 0, :C]


# ---------------------------------------------------------------------------
# Pure-JAX f32 reference (for correctness check)
# ---------------------------------------------------------------------------

def _ref_forward(input_ids, attention_mask, token_type_ids, p):
    B, S = input_ids.shape
    H = p["word_emb"].shape[1]
    pos_ids = jnp.arange(S, dtype=jnp.int32)
    x = (p["word_emb"][input_ids] + p["type_emb"][token_type_ids]
         + p["pos_emb"][pos_ids][None])
    ln = lambda v, g, b: (v - v.mean(-1, keepdims=True)) * jax.lax.rsqrt(
        ((v - v.mean(-1, keepdims=True)) ** 2).mean(-1, keepdims=True) + 1e-12) * g + b
    x = ln(x, p["emb_ln_g"], p["emb_ln_b"])

    q = x @ p["w_q"] + p["b_q"]
    k = x @ p["w_k"] + p["b_k"]
    v = x @ p["w_v"] + p["b_v"]
    s = jnp.einsum("bqd,bkd->bqk", q, k) / jnp.sqrt(jnp.float32(H))
    s = s + (1.0 - attention_mask.astype(jnp.float32))[:, None, :] * (-10000.0)
    pr = jax.nn.softmax(s, axis=-1)
    ctx = jnp.einsum("bqk,bkd->bqd", pr, v)
    h1 = ln(x + (ctx @ p["w_o"] + p["b_o"]), p["ln1_g"], p["ln1_b"])
    ff = jax.nn.gelu(h1 @ p["w_ff1"] + p["b_ff1"], approximate=True) @ p["w_ff2"] + p["b_ff2"]
    h2 = ln(h1 + ff, p["ln2_g"], p["ln2_b"])
    pooled = jnp.tanh(h2[:, 0, :] @ p["w_pool"] + p["b_pool"])
    return pooled @ p["w_cls"] + p["b_cls"]


# ---------------------------------------------------------------------------
# Deterministic parameter init + demo
# ---------------------------------------------------------------------------

def init_params(key, vocab=50, max_pos=16, H=32, I=64, C=7):
    ks = jax.random.split(key, 12)
    n = lambda k, shape: (0.02 * jax.random.normal(k, shape)).astype(jnp.float32)
    return {
        "word_emb": n(ks[0], (vocab, H)),
        "pos_emb": n(ks[1], (max_pos, H)),
        "type_emb": n(ks[2], (2, H)),
        "emb_ln_g": jnp.ones((1, H), jnp.float32),
        "emb_ln_b": jnp.zeros((1, H), jnp.float32),
        "w_q": n(ks[3], (H, H)), "b_q": jnp.zeros((1, H), jnp.float32),
        "w_k": n(ks[4], (H, H)), "b_k": jnp.zeros((1, H), jnp.float32),
        "w_v": n(ks[5], (H, H)), "b_v": jnp.zeros((1, H), jnp.float32),
        "w_o": n(ks[6], (H, H)), "b_o": jnp.zeros((1, H), jnp.float32),
        "ln1_g": jnp.ones((1, H), jnp.float32), "ln1_b": jnp.zeros((1, H), jnp.float32),
        "w_ff1": n(ks[7], (H, I)), "b_ff1": jnp.zeros((1, I), jnp.float32),
        "w_ff2": n(ks[8], (I, H)), "b_ff2": jnp.zeros((1, H), jnp.float32),
        "ln2_g": jnp.ones((1, H), jnp.float32), "ln2_b": jnp.zeros((1, H), jnp.float32),
        "w_pool": n(ks[9], (H, H)), "b_pool": jnp.zeros((1, H), jnp.float32),
        "w_cls": n(ks[10], (H, C)), "b_cls": jnp.zeros((1, C), jnp.float32),
    }


if __name__ == "__main__":
    B, S, H, I, C, vocab = 2, 8, 32, 64, 7, 50
    key = jax.random.PRNGKey(0)
    k_param, k_ids, k_type = jax.random.split(key, 3)

    params = init_params(k_param, vocab=vocab, max_pos=S, H=H, I=I, C=C)

    input_ids = jax.random.randint(k_ids, (B, S), 0, vocab, dtype=jnp.int32)
    token_type_ids = jnp.zeros((B, S), dtype=jnp.int32).at[:, S // 2:].set(1)
    attention_mask = jnp.ones((B, S), dtype=jnp.float32).at[1, S - 2:].set(0.0)

    logits = bert_classifier_forward(input_ids, attention_mask, token_type_ids, params)
    logits = jax.block_until_ready(logits)
    assert logits.shape == (B, C) and logits.dtype == jnp.float32

    # f32 reference; tolerance covers bf16 MXU operands + approx-reciprocal softmax.
    ref = _ref_forward(input_ids, attention_mask, token_type_ids, params)
    assert jnp.allclose(logits, ref, atol=3e-3, rtol=3e-3), "Pallas output mismatch vs reference"

    print("KERNEL_OK")
</pallas_src>

<mosaic_0001>
module attributes {stable_mosaic.version = 11 : i64} {
  func.func @fused_bert_kernel(%arg0: i32, %arg1: memref<1x8x32xf32, #tpu.memory_space<vmem>>, %arg2: memref<1x1x8xf32, #tpu.memory_space<vmem>>, %arg3: memref<32x32xbf16, #tpu.memory_space<vmem>>, %arg4: memref<1x32xf32, #tpu.memory_space<vmem>>, %arg5: memref<32x32xbf16, #tpu.memory_space<vmem>>, %arg6: memref<1x32xf32, #tpu.memory_space<vmem>>, %arg7: memref<32x32xbf16, #tpu.memory_space<vmem>>, %arg8: memref<1x32xf32, #tpu.memory_space<vmem>>, %arg9: memref<32x32xbf16, #tpu.memory_space<vmem>>, %arg10: memref<1x32xf32, #tpu.memory_space<vmem>>, %arg11: memref<1x32xf32, #tpu.memory_space<vmem>>, %arg12: memref<1x32xf32, #tpu.memory_space<vmem>>, %arg13: memref<32x64xbf16, #tpu.memory_space<vmem>>, %arg14: memref<1x64xf32, #tpu.memory_space<vmem>>, %arg15: memref<64x32xbf16, #tpu.memory_space<vmem>>, %arg16: memref<1x32xf32, #tpu.memory_space<vmem>>, %arg17: memref<1x32xf32, #tpu.memory_space<vmem>>, %arg18: memref<1x32xf32, #tpu.memory_space<vmem>>, %arg19: memref<32x32xbf16, #tpu.memory_space<vmem>>, %arg20: memref<1x32xf32, #tpu.memory_space<vmem>>, %arg21: memref<32x128xbf16, #tpu.memory_space<vmem>>, %arg22: memref<1x128xf32, #tpu.memory_space<vmem>>, %arg23: memref<1x1x128xf32, #tpu.memory_space<vmem>>) attributes {dimension_semantics = [#tpu.dimension_semantics<parallel>], iteration_bounds = array<i64: 2>, scalar_prefetch = 0 : i64, scratch_operands = 0 : i64, tpu.core_type = #tpu.core_type<tc>, window_params = [{transform_indices = @transform_0, window_bounds = array<i64: 1, 8, 32>}, {transform_indices = @transform_1, window_bounds = array<i64: 1, 1, 8>}, {pipeline_mode = #tpu.pipeline_mode<synchronous>, transform_indices = @transform_2, window_bounds = array<i64: 32, 32>}, {pipeline_mode = #tpu.pipeline_mode<synchronous>, transform_indices = @transform_3, window_bounds = array<i64: 1, 32>}, {pipeline_mode = #tpu.pipeline_mode<synchronous>, transform_indices = @transform_4, window_bounds = array<i64: 32, 32>}, {pipeline_mode = #tpu.pipeline_mode<synchronous>, transform_indices = @transform_5, window_bounds = array<i64: 1, 32>}, {pipeline_mode = #tpu.pipeline_mode<synchronous>, transform_indices = @transform_6, window_bounds = array<i64: 32, 32>}, {pipeline_mode = #tpu.pipeline_mode<synchronous>, transform_indices = @transform_7, window_bounds = array<i64: 1, 32>}, {pipeline_mode = #tpu.pipeline_mode<synchronous>, transform_indices = @transform_8, window_bounds = array<i64: 32, 32>}, {pipeline_mode = #tpu.pipeline_mode<synchronous>, transform_indices = @transform_9, window_bounds = array<i64: 1, 32>}, {pipeline_mode = #tpu.pipeline_mode<synchronous>, transform_indices = @transform_10, window_bounds = array<i64: 1, 32>}, {pipeline_mode = #tpu.pipeline_mode<synchronous>, transform_indices = @transform_11, window_bounds = array<i64: 1, 32>}, {pipeline_mode = #tpu.pipeline_mode<synchronous>, transform_indices = @transform_12, window_bounds = array<i64: 32, 64>}, {pipeline_mode = #tpu.pipeline_mode<synchronous>, transform_indices = @transform_13, window_bounds = array<i64: 1, 64>}, {pipeline_mode = #tpu.pipeline_mode<synchronous>, transform_indices = @transform_14, window_bounds = array<i64: 64, 32>}, {pipeline_mode = #tpu.pipeline_mode<synchronous>, transform_indices = @transform_15, window_bounds = array<i64: 1, 32>}, {pipeline_mode = #tpu.pipeline_mode<synchronous>, transform_indices = @transform_16, window_bounds = array<i64: 1, 32>}, {pipeline_mode = #tpu.pipeline_mode<synchronous>, transform_indices = @transform_17, window_bounds = array<i64: 1, 32>}, {pipeline_mode = #tpu.pipeline_mode<synchronous>, transform_indices = @transform_18, window_bounds = array<i64: 32, 32>}, {pipeline_mode = #tpu.pipeline_mode<synchronous>, transform_indices = @transform_19, window_bounds = array<i64: 1, 32>}, {pipeline_mode = #tpu.pipeline_mode<synchronous>, transform_indices = @transform_20, window_bounds = array<i64: 32, 128>}, {pipeline_mode = #tpu.pipeline_mode<synchronous>, transform_indices = @transform_21, window_bounds = array<i64: 1, 128>}, {transform_indices = @transform_22, window_bounds = array<i64: 1, 1, 128>}]} {
    %c0 = arith.constant 0 : index
    %c0_0 = arith.constant 0 : index
    %c0_1 = arith.constant 0 : index
    %0 = vector.load %arg1[%c0, %c0_0, %c0_1] : memref<1x8x32xf32, #tpu.memory_space<vmem>>, vector<1x8x32xf32>
    %1 = vector.shape_cast %0 : vector<1x8x32xf32> to vector<8x32xf32>
    %2 = arith.truncf %1 : vector<8x32xf32> to vector<8x32xbf16>
    %c0_2 = arith.constant 0 : index
    %c0_3 = arith.constant 0 : index
    %3 = vector.load %arg3[%c0_2, %c0_3] : memref<32x32xbf16, #tpu.memory_space<vmem>>, vector<32x32xbf16>
    %cst = arith.constant dense<0.000000e+00> : vector<8x32xf32>
    %4 = tpu.matmul %2, %3, %cst {dimension_numbers = #tpu.dot_dimension_numbers<[1], [0], [0], [1], [0, 0, 1, 1], [], []>} : vector<8x32xbf16>, vector<32x32xbf16>, vector<8x32xf32> -> vector<8x32xf32>
    %c0_4 = arith.constant 0 : index
    %c0_5 = arith.constant 0 : index
    %5 = vector.load %arg4[%c0_4, %c0_5] : memref<1x32xf32, #tpu.memory_space<vmem>>, vector<1x32xf32>
    %6 = vector.broadcast %5 : vector<1x32xf32> to vector<8x32xf32>
    %7 = arith.addf %4, %6 : vector<8x32xf32>
    %c0_6 = arith.constant 0 : index
    %c0_7 = arith.constant 0 : index
    %8 = vector.load %arg5[%c0_6, %c0_7] : memref<32x32xbf16, #tpu.memory_space<vmem>>, vector<32x32xbf16>
    %cst_8 = arith.constant dense<0.000000e+00> : vector<8x32xf32>
    %9 = tpu.matmul %2, %8, %cst_8 {dimension_numbers = #tpu.dot_dimension_numbers<[1], [0], [0], [1], [0, 0, 1, 1], [], []>} : vector<8x32xbf16>, vector<32x32xbf16>, vector<8x32xf32> -> vector<8x32xf32>
    %c0_9 = arith.constant 0 : index
    %c0_10 = arith.constant 0 : index
    %10 = vector.load %arg6[%c0_9, %c0_10] : memref<1x32xf32, #tpu.memory_space<vmem>>, vector<1x32xf32>
    %11 = vector.broadcast %10 : vector<1x32xf32> to vector<8x32xf32>
    %12 = arith.addf %9, %11 : vector<8x32xf32>
    %c0_11 = arith.constant 0 : index
    %c0_12 = arith.constant 0 : index
    %13 = vector.load %arg7[%c0_11, %c0_12] : memref<32x32xbf16, #tpu.memory_space<vmem>>, vector<32x32xbf16>
    %cst_13 = arith.constant dense<0.000000e+00> : vector<8x32xf32>
    %14 = tpu.matmul %2, %13, %cst_13 {dimension_numbers = #tpu.dot_dimension_numbers<[1], [0], [0], [1], [0, 0, 1, 1], [], []>} : vector<8x32xbf16>, vector<32x32xbf16>, vector<8x32xf32> -> vector<8x32xf32>
    %c0_14 = arith.constant 0 : index
    %c0_15 = arith.constant 0 : index
    %15 = vector.load %arg8[%c0_14, %c0_15] : memref<1x32xf32, #tpu.memory_space<vmem>>, vector<1x32xf32>
    %16 = vector.broadcast %15 : vector<1x32xf32> to vector<8x32xf32>
    %17 = arith.addf %14, %16 : vector<8x32xf32>
    %cst_16 = arith.constant 3.200000e+01 : f32
    %18 = math.sqrt %cst_16 : f32
    %cst_17 = arith.constant 1.000000e+00 : f32
    %19 = arith.divf %cst_17, %18 : f32
    %20 = arith.truncf %7 : vector<8x32xf32> to vector<8x32xbf16>
    %21 = arith.truncf %12 : vector<8x32xf32> to vector<8x32xbf16>
    "tpu.trace_start"() <{level = 10 : i32, message = "qd,kd->qk"}> : () -> ()
    %cst_18 = arith.constant dense<0.000000e+00> : vector<8x8xf32>
    %22 = tpu.matmul %20, %21, %cst_18 {dimension_numbers = #tpu.dot_dimension_numbers<[1], [1], [0], [0], [0, 0, 1, 0], [], []>} : vector<8x32xbf16>, vector<8x32xbf16>, vector<8x8xf32> -> vector<8x8xf32>
    "tpu.trace_stop"() : () -> ()
    %23 = vector.broadcast %19 : f32 to vector<8x8xf32>
    %24 = arith.mulf %22, %23 : vector<8x8xf32>
    %c0_19 = arith.constant 0 : index
    %c0_20 = arith.constant 0 : index
    %c0_21 = arith.constant 0 : index
    %25 = vector.load %arg2[%c0_19, %c0_20, %c0_21] : memref<1x1x8xf32, #tpu.memory_space<vmem>>, vector<1x1x8xf32>
    %26 = vector.shape_cast %25 : vector<1x1x8xf32> to vector<1x8xf32>
    %27 = vector.broadcast %26 : vector<1x8xf32> to vector<8x8xf32>
    %28 = arith.addf %24, %27 : vector<8x8xf32>
    %cst_22 = arith.constant dense<0xFF800000> : vector<8xf32>
    %29 = vector.multi_reduction <maximumf>, %28, %cst_22 [1] : vector<8x8xf32> to vector<8xf32>
    %30 = vector.shape_cast %29 : vector<8xf32> to vector<8x1xf32>
    %31 = vector.broadcast %30 : vector<8x1xf32> to vector<8x8xf32>
    %32 = arith.subf %28, %31 : vector<8x8xf32>
    %33 = math.exp %32 : vector<8x8xf32>
    %cst_23 = arith.constant dense<0.000000e+00> : vector<8xf32>
    %34 = vector.multi_reduction <add>, %33, %cst_23 [1] : vector<8x8xf32> to vector<8xf32>
    %35 = vector.shape_cast %34 : vector<8xf32> to vector<8x1xf32>
    %36 = tpu.reciprocal %35 {approx = true} : vector<8x1xf32> -> vector<8x1xf32>
    %37 = vector.broadcast %36 : vector<8x1xf32> to vector<8x8xf32>
    %38 = arith.mulf %33, %37 : vector<8x8xf32>
    %39 = arith.truncf %38 : vector<8x8xf32> to vector<8x8xbf16>
    %40 = arith.truncf %17 : vector<8x32xf32> to vector<8x32xbf16>
    "tpu.trace_start"() <{level = 10 : i32, message = "qk,kd->qd"}> : () -> ()
    %cst_24 = arith.constant dense<0.000000e+00> : vector<8x32xf32>
    %41 = tpu.matmul %39, %40, %cst_24 {dimension_numbers = #tpu.dot_dimension_numbers<[1], [0], [0], [1], [0, 0, 1, 1], [], []>} : vector<8x8xbf16>, vector<8x32xbf16>, vector<8x32xf32> -> vector<8x32xf32>
    "tpu.trace_stop"() : () -> ()
    %42 = arith.truncf %41 : vector<8x32xf32> to vector<8x32xbf16>
    %c0_25 = arith.constant 0 : index
    %c0_26 = arith.constant 0 : index
    %43 = vector.load %arg9[%c0_25, %c0_26] : memref<32x32xbf16, #tpu.memory_space<vmem>>, vector<32x32xbf16>
    %cst_27 = arith.constant dense<0.000000e+00> : vector<8x32xf32>
    %44 = tpu.matmul %42, %43, %cst_27 {dimension_numbers = #tpu.dot_dimension_numbers<[1], [0], [0], [1], [0, 0, 1, 1], [], []>} : vector<8x32xbf16>, vector<32x32xbf16>, vector<8x32xf32> -> vector<8x32xf32>
    %c0_28 = arith.constant 0 : index
    %c0_29 = arith.constant 0 : index
    %45 = vector.load %arg10[%c0_28, %c0_29] : memref<1x32xf32, #tpu.memory_space<vmem>>, vector<1x32xf32>
    %46 = vector.broadcast %45 : vector<1x32xf32> to vector<8x32xf32>
    %47 = arith.addf %44, %46 : vector<8x32xf32>
    %48 = arith.addf %1, %47 : vector<8x32xf32>
    %c0_30 = arith.constant 0 : index
    %c0_31 = arith.constant 0 : index
    %49 = vector.load %arg11[%c0_30, %c0_31] : memref<1x32xf32, #tpu.memory_space<vmem>>, vector<1x32xf32>
    %c0_32 = arith.constant 0 : index
    %c0_33 = arith.constant 0 : index
    %50 = vector.load %arg12[%c0_32, %c0_33] : memref<1x32xf32, #tpu.memory_space<vmem>>, vector<1x32xf32>
    %cst_34 = arith.constant dense<0.000000e+00> : vector<8xf32>
    %51 = vector.multi_reduction <add>, %48, %cst_34 [1] : vector<8x32xf32> to vector<8xf32>
    %52 = vector.shape_cast %51 : vector<8xf32> to vector<8x1xf32>
    %cst_35 = arith.constant 3.200000e+01 : f32
    %53 = vector.broadcast %cst_35 : f32 to vector<8x1xf32>
    %54 = arith.divf %52, %53 : vector<8x1xf32>
    %55 = vector.broadcast %54 : vector<8x1xf32> to vector<8x32xf32>
    %56 = arith.subf %48, %55 : vector<8x32xf32>
    %57 = arith.mulf %56, %56 : vector<8x32xf32>
    %cst_36 = arith.constant dense<0.000000e+00> : vector<8xf32>
    %58 = vector.multi_reduction <add>, %57, %cst_36 [1] : vector<8x32xf32> to vector<8xf32>
    %59 = vector.shape_cast %58 : vector<8xf32> to vector<8x1xf32>
    %cst_37 = arith.constant 3.200000e+01 : f32
    %60 = vector.broadcast %cst_37 : f32 to vector<8x1xf32>
    %61 = arith.divf %59, %60 : vector<8x1xf32>
    %62 = vector.broadcast %54 : vector<8x1xf32> to vector<8x32xf32>
    %63 = arith.subf %48, %62 : vector<8x32xf32>
    %cst_38 = arith.constant 9.99999996E-13 : f32
    %64 = vector.broadcast %cst_38 : f32 to vector<8x1xf32>
    %65 = arith.addf %61, %64 : vector<8x1xf32>
    %66 = math.rsqrt %65 : vector<8x1xf32>
    %67 = vector.broadcast %66 : vector<8x1xf32> to vector<8x32xf32>
    %68 = arith.mulf %63, %67 : vector<8x32xf32>
    %69 = vector.broadcast %49 : vector<1x32xf32> to vector<8x32xf32>
    %70 = arith.mulf %68, %69 : vector<8x32xf32>
    %71 = vector.broadcast %50 : vector<1x32xf32> to vector<8x32xf32>
    %72 = arith.addf %70, %71 : vector<8x32xf32>
    %73 = arith.truncf %72 : vector<8x32xf32> to vector<8x32xbf16>
    %c0_39 = arith.constant 0 : index
    %c0_40 = arith.constant 0 : index
    %74 = vector.load %arg13[%c0_39, %c0_40] : memref<32x64xbf16, #tpu.memory_space<vmem>>, vector<32x64xbf16>
    %cst_41 = arith.constant dense<0.000000e+00> : vector<8x64xf32>
    %75 = tpu.matmul %73, %74, %cst_41 {dimension_numbers = #tpu.dot_dimension_numbers<[1], [0], [0], [1], [0, 0, 1, 1], [], []>} : vector<8x32xbf16>, vector<32x64xbf16>, vector<8x64xf32> -> vector<8x64xf32>
    %c0_42 = arith.constant 0 : index
    %c0_43 = arith.constant 0 : index
    %76 = vector.load %arg14[%c0_42, %c0_43] : memref<1x64xf32, #tpu.memory_space<vmem>>, vector<1x64xf32>
    %77 = vector.broadcast %76 : vector<1x64xf32> to vector<8x64xf32>
    %78 = arith.addf %75, %77 : vector<8x64xf32>
    %79 = arith.mulf %78, %78 : vector<8x64xf32>
    %80 = arith.mulf %78, %79 : vector<8x64xf32>
    %cst_44 = arith.constant 4.471500e-02 : f32
    %81 = vector.broadcast %cst_44 : f32 to vector<8x64xf32>
    %82 = arith.mulf %81, %80 : vector<8x64xf32>
    %83 = arith.addf %78, %82 : vector<8x64xf32>
    %cst_45 = arith.constant 0.797884583 : f32
    %84 = vector.broadcast %cst_45 : f32 to vector<8x64xf32>
    %85 = arith.mulf %84, %83 : vector<8x64xf32>
    %86 = math.tanh %85 : vector<8x64xf32>
    %cst_46 = arith.constant 1.000000e+00 : f32
    %87 = vector.broadcast %cst_46 : f32 to vector<8x64xf32>
    %88 = arith.addf %87, %86 : vector<8x64xf32>
    %cst_47 = arith.constant 5.000000e-01 : f32
    %89 = vector.broadcast %cst_47 : f32 to vector<8x64xf32>
    %90 = arith.mulf %89, %88 : vector<8x64xf32>
    %91 = arith.mulf %78, %90 : vector<8x64xf32>
    %92 = arith.truncf %91 : vector<8x64xf32> to vector<8x64xbf16>
    %c0_48 = arith.constant 0 : index
    %c0_49 = arith.constant 0 : index
    %93 = vector.load %arg15[%c0_48, %c0_49] : memref<64x32xbf16, #tpu.memory_space<vmem>>, vector<64x32xbf16>
    %cst_50 = arith.constant dense<0.000000e+00> : vector<8x32xf32>
    %94 = tpu.matmul %92, %93, %cst_50 {dimension_numbers = #tpu.dot_dimension_numbers<[1], [0], [0], [1], [0, 0, 1, 1], [], []>} : vector<8x64xbf16>, vector<64x32xbf16>, vector<8x32xf32> -> vector<8x32xf32>
    %c0_51 = arith.constant 0 : index
    %c0_52 = arith.constant 0 : index
    %95 = vector.load %arg16[%c0_51, %c0_52] : memref<1x32xf32, #tpu.memory_space<vmem>>, vector<1x32xf32>
    %96 = vector.broadcast %95 : vector<1x32xf32> to vector<8x32xf32>
    %97 = arith.addf %94, %96 : vector<8x32xf32>
    %98 = arith.addf %72, %97 : vector<8x32xf32>
    %c0_53 = arith.constant 0 : index
    %c0_54 = arith.constant 0 : index
    %99 = vector.load %arg17[%c0_53, %c0_54] : memref<1x32xf32, #tpu.memory_space<vmem>>, vector<1x32xf32>
    %c0_55 = arith.constant 0 : index
    %c0_56 = arith.constant 0 : index
    %100 = vector.load %arg18[%c0_55, %c0_56] : memref<1x32xf32, #tpu.memory_space<vmem>>, vector<1x32xf32>
    %cst_57 = arith.constant dense<0.000000e+00> : vector<8xf32>
    %101 = vector.multi_reduction <add>, %98, %cst_57 [1] : vector<8x32xf32> to vector<8xf32>
    %102 = vector.shape_cast %101 : vector<8xf32> to vector<8x1xf32>
    %cst_58 = arith.constant 3.200000e+01 : f32
    %103 = vector.broadcast %cst_58 : f32 to vector<8x1xf32>
    %104 = arith.divf %102, %103 : vector<8x1xf32>
    %105 = vector.broadcast %104 : vector<8x1xf32> to vector<8x32xf32>
    %106 = arith.subf %98, %105 : vector<8x32xf32>
    %107 = arith.mulf %106, %106 : vector<8x32xf32>
    %cst_59 = arith.constant dense<0.000000e+00> : vector<8xf32>
    %108 = vector.multi_reduction <add>, %107, %cst_59 [1] : vector<8x32xf32> to vector<8xf32>
    %109 = vector.shape_cast %108 : vector<8xf32> to vector<8x1xf32>
    %cst_60 = arith.constant 3.200000e+01 : f32
    %110 = vector.broadcast %cst_60 : f32 to vector<8x1xf32>
    %111 = arith.divf %109, %110 : vector<8x1xf32>
    %112 = vector.broadcast %104 : vector<8x1xf32> to vector<8x32xf32>
    %113 = arith.subf %98, %112 : vector<8x32xf32>
    %cst_61 = arith.constant 9.99999996E-13 : f32
    %114 = vector.broadcast %cst_61 : f32 to vector<8x1xf32>
    %115 = arith.addf %111, %114 : vector<8x1xf32>
    %116 = math.rsqrt %115 : vector<8x1xf32>
    %117 = vector.broadcast %116 : vector<8x1xf32> to vector<8x32xf32>
    %118 = arith.mulf %113, %117 : vector<8x32xf32>
    %119 = vector.broadcast %99 : vector<1x32xf32> to vector<8x32xf32>
    %120 = arith.mulf %118, %119 : vector<8x32xf32>
    %121 = vector.broadcast %100 : vector<1x32xf32> to vector<8x32xf32>
    %122 = arith.addf %120, %121 : vector<8x32xf32>
    %123 = vector.extract_strided_slice %122 {offsets = [0, 0], sizes = [1, 32], strides = [1, 1]} : vector<8x32xf32> to vector<1x32xf32>
    %124 = arith.truncf %123 : vector<1x32xf32> to vector<1x32xbf16>
    %c0_62 = arith.constant 0 : index
    %c0_63 = arith.constant 0 : index
    %125 = vector.load %arg19[%c0_62, %c0_63] : memref<32x32xbf16, #tpu.memory_space<vmem>>, vector<32x32xbf16>
    %cst_64 = arith.constant dense<0.000000e+00> : vector<1x32xf32>
    %126 = tpu.matmul %124, %125, %cst_64 {dimension_numbers = #tpu.dot_dimension_numbers<[1], [0], [0], [1], [0, 0, 1, 1], [], []>} : vector<1x32xbf16>, vector<32x32xbf16>, vector<1x32xf32> -> vector<1x32xf32>
    %c0_65 = arith.constant 0 : index
    %c0_66 = arith.constant 0 : index
    %127 = vector.load %arg20[%c0_65, %c0_66] : memref<1x32xf32, #tpu.memory_space<vmem>>, vector<1x32xf32>
    %128 = arith.addf %126, %127 : vector<1x32xf32>
    %129 = math.tanh %128 : vector<1x32xf32>
    %130 = arith.truncf %129 : vector<1x32xf32> to vector<1x32xbf16>
    %c0_67 = arith.constant 0 : index
    %c0_68 = arith.constant 0 : index
    %131 = vector.load %arg21[%c0_67, %c0_68] : memref<32x128xbf16, #tpu.memory_space<vmem>>, vector<32x128xbf16>
    %cst_69 = arith.constant dense<0.000000e+00> : vector<1x128xf32>
    %132 = tpu.matmul %130, %131, %cst_69 {dimension_numbers = #tpu.dot_dimension_numbers<[1], [0], [0], [1], [0, 0, 1, 1], [], []>} : vector<1x32xbf16>, vector<32x128xbf16>, vector<1x128xf32> -> vector<1x128xf32>
    %c0_70 = arith.constant 0 : index
    %c0_71 = arith.constant 0 : index
    %133 = vector.load %arg22[%c0_70, %c0_71] : memref<1x128xf32, #tpu.memory_space<vmem>>, vector<1x128xf32>
    %134 = arith.addf %132, %133 : vector<1x128xf32>
    %c0_72 = arith.constant 0 : index
    %c0_73 = arith.constant 0 : index
    %c0_74 = arith.constant 0 : index
    %135 = vector.load %arg23[%c0_72, %c0_73, %c0_74] : memref<1x1x128xf32, #tpu.memory_space<vmem>>, vector<1x1x128xf32>
    %136 = vector.shape_cast %135 : vector<1x1x128xf32> to vector<1x128xf32>
    %137 = vector.shape_cast %134 : vector<1x128xf32> to vector<1x1x128xf32>
    tpu.vector_store %arg23[%c0_72, %c0_73, %c0_74], %137 {strides = array<i32>} : memref<1x1x128xf32, #tpu.memory_space<vmem>>, vector<1x1x128xf32>,
    return
  }
  func.func @transform_0(%arg0: i32) -> (i32, i32, i32) {
    %c0_i32 = arith.constant 0 : i32
    %c0_i32_0 = arith.constant 0 : i32
    %c0_i32_1 = arith.constant 0 : i32
    return %arg0, %c0_i32, %c0_i32_0 : i32, i32, i32
  }
  func.func @transform_1(%arg0: i32) -> (i32, i32, i32) {
    %c0_i32 = arith.constant 0 : i32
    %c0_i32_0 = arith.constant 0 : i32
    %c0_i32_1 = arith.constant 0 : i32
    return %arg0, %c0_i32, %c0_i32_0 : i32, i32, i32
  }
  func.func @transform_2(%arg0: i32) -> (i32, i32) {
    %c0_i32 = arith.constant 0 : i32
    %c0_i32_0 = arith.constant 0 : i32
    %c0_i32_1 = arith.constant 0 : i32
    return %c0_i32, %c0_i32_0 : i32, i32
  }
  func.func @transform_3(%arg0: i32) -> (i32, i32) {
    %c0_i32 = arith.constant 0 : i32
    %c0_i32_0 = arith.constant 0 : i32
    %c0_i32_1 = arith.constant 0 : i32
    return %c0_i32, %c0_i32_0 : i32, i32
  }
  func.func @transform_4(%arg0: i32) -> (i32, i32) {
    %c0_i32 = arith.constant 0 : i32
    %c0_i32_0 = arith.constant 0 : i32
    %c0_i32_1 = arith.constant 0 : i32
    return %c0_i32, %c0_i32_0 : i32, i32
  }
  func.func @transform_5(%arg0: i32) -> (i32, i32) {
    %c0_i32 = arith.constant 0 : i32
    %c0_i32_0 = arith.constant 0 : i32
    %c0_i32_1 = arith.constant 0 : i32
    return %c0_i32, %c0_i32_0 : i32, i32
  }
  func.func @transform_6(%arg0: i32) -> (i32, i32) {
    %c0_i32 = arith.constant 0 : i32
    %c0_i32_0 = arith.constant 0 : i32
    %c0_i32_1 = arith.constant 0 : i32
    return %c0_i32, %c0_i32_0 : i32, i32
  }
  func.func @transform_7(%arg0: i32) -> (i32, i32) {
    %c0_i32 = arith.constant 0 : i32
    %c0_i32_0 = arith.constant 0 : i32
    %c0_i32_1 = arith.constant 0 : i32
    return %c0_i32, %c0_i32_0 : i32, i32
  }
  func.func @transform_8(%arg0: i32) -> (i32, i32) {
    %c0_i32 = arith.constant 0 : i32
    %c0_i32_0 = arith.constant 0 : i32
    %c0_i32_1 = arith.constant 0 : i32
    return %c0_i32, %c0_i32_0 : i32, i32
  }
  func.func @transform_9(%arg0: i32) -> (i32, i32) {
    %c0_i32 = arith.constant 0 : i32
    %c0_i32_0 = arith.constant 0 : i32
    %c0_i32_1 = arith.constant 0 : i32
    return %c0_i32, %c0_i32_0 : i32, i32
  }
  func.func @transform_10(%arg0: i32) -> (i32, i32) {
    %c0_i32 = arith.constant 0 : i32
    %c0_i32_0 = arith.constant 0 : i32
    %c0_i32_1 = arith.constant 0 : i32
    return %c0_i32, %c0_i32_0 : i32, i32
  }
  func.func @transform_11(%arg0: i32) -> (i32, i32) {
    %c0_i32 = arith.constant 0 : i32
    %c0_i32_0 = arith.constant 0 : i32
    %c0_i32_1 = arith.constant 0 : i32
    return %c0_i32, %c0_i32_0 : i32, i32
  }
  func.func @transform_12(%arg0: i32) -> (i32, i32) {
    %c0_i32 = arith.constant 0 : i32
    %c0_i32_0 = arith.constant 0 : i32
    %c0_i32_1 = arith.constant 0 : i32
    return %c0_i32, %c0_i32_0 : i32, i32
  }
  func.func @transform_13(%arg0: i32) -> (i32, i32) {
    %c0_i32 = arith.constant 0 : i32
    %c0_i32_0 = arith.constant 0 : i32
    %c0_i32_1 = arith.constant 0 : i32
    return %c0_i32, %c0_i32_0 : i32, i32
  }
  func.func @transform_14(%arg0: i32) -> (i32, i32) {
    %c0_i32 = arith.constant 0 : i32
    %c0_i32_0 = arith.constant 0 : i32
    %c0_i32_1 = arith.constant 0 : i32
    return %c0_i32, %c0_i32_0 : i32, i32
  }
  func.func @transform_15(%arg0: i32) -> (i32, i32) {
    %c0_i32 = arith.constant 0 : i32
    %c0_i32_0 = arith.constant 0 : i32
    %c0_i32_1 = arith.constant 0 : i32
    return %c0_i32, %c0_i32_0 : i32, i32
  }
  func.func @transform_16(%arg0: i32) -> (i32, i32) {
    %c0_i32 = arith.constant 0 : i32
    %c0_i32_0 = arith.constant 0 : i32
    %c0_i32_1 = arith.constant 0 : i32
    return %c0_i32, %c0_i32_0 : i32, i32
  }
  func.func @transform_17(%arg0: i32) -> (i32, i32) {
    %c0_i32 = arith.constant 0 : i32
    %c0_i32_0 = arith.constant 0 : i32
    %c0_i32_1 = arith.constant 0 : i32
    return %c0_i32, %c0_i32_0 : i32, i32
  }
  func.func @transform_18(%arg0: i32) -> (i32, i32) {
    %c0_i32 = arith.constant 0 : i32
    %c0_i32_0 = arith.constant 0 : i32
    %c0_i32_1 = arith.constant 0 : i32
    return %c0_i32, %c0_i32_0 : i32, i32
  }
  func.func @transform_19(%arg0: i32) -> (i32, i32) {
    %c0_i32 = arith.constant 0 : i32
    %c0_i32_0 = arith.constant 0 : i32
    %c0_i32_1 = arith.constant 0 : i32
    return %c0_i32, %c0_i32_0 : i32, i32
  }
  func.func @transform_20(%arg0: i32) -> (i32, i32) {
    %c0_i32 = arith.constant 0 : i32
    %c0_i32_0 = arith.constant 0 : i32
    %c0_i32_1 = arith.constant 0 : i32
    return %c0_i32, %c0_i32_0 : i32, i32
  }
  func.func @transform_21(%arg0: i32) -> (i32, i32) {
    %c0_i32 = arith.constant 0 : i32
    %c0_i32_0 = arith.constant 0 : i32
    %c0_i32_1 = arith.constant 0 : i32
    return %c0_i32, %c0_i32_0 : i32, i32
  }
  func.func @transform_22(%arg0: i32) -> (i32, i32, i32) {
    %c0_i32 = arith.constant 0 : i32
    %c0_i32_0 = arith.constant 0 : i32
    %c0_i32_1 = arith.constant 0 : i32
    return %arg0, %c0_i32, %c0_i32_0 : i32, i32, i32
  }
}

</mosaic_0001>

<bundles_post_ra>
// kernel: tpu_custom_call.1
= control target key start
LH: loop header
LB: loop body
LE: loop exit
PB: predicated region body
PF: predicated region fallthrough
CT: control target
= control target key end

     0   :  { %s3326_s0 = inlined_call_operand.vmem [shape: f32[2,8,32], index: 0, kind: input, shape index: {}]   ;;  %s3327_s1 = inlined_call_operand.hbm [shape: f32[2,1,8], index: 1, kind: input, shape index: {}]   ;;  %s3328_s2 = inlined_call_operand.vmem [shape: bf16[32,32], index: 2, kind: input, shape index: {}]   ;;  %s3329_s3 = inlined_call_operand.hbm [shape: f32[1,32], index: 3, kind: input, shape index: {}]   ;;  %s3330_s4 = inlined_call_operand.vmem [shape: bf16[32,32], index: 4, kind: input, shape index: {}]   ;;  %s3331_s5 = inlined_call_operand.hbm [shape: f32[1,32], index: 5, kind: input, shape index: {}]   ;;  %s3332_s6 = inlined_call_operand.hbm [shape: bf16[32,32], index: 6, kind: input, shape index: {}]   ;;  %s3333_s7 = inlined_call_operand.hbm [shape: f32[1,32], index: 7, kind: input, shape index: {}]   ;;  %s3334_s8 = inlined_call_operand.hbm [shape: bf16[32,32], index: 8, kind: input, shape index: {}]   ;;  %s3335_s9 = inlined_call_operand.hbm [shape: f32[1,32], index: 9, kind: input, shape index: {}]   ;;  %s3336_s10 = inlined_call_operand.hbm [shape: f32[1,32], index: 10, kind: input, shape index: {}]   ;;  %s3337_s11 = inlined_call_operand.hbm [shape: f32[1,32], index: 11, kind: input, shape index: {}]   ;;  %s3338_s12 = inlined_call_operand.vmem [shape: bf16[32,64], index: 12, kind: input, shape index: {}]   ;;  %s3339_s13 = inlined_call_operand.hbm [shape: f32[1,64], index: 13, kind: input, shape index: {}]   ;;  %s3340_s14 = inlined_call_operand.vmem [shape: bf16[64,32], index: 14, kind: input, shape index: {}]   ;;  %s3341_s15 = inlined_call_operand.hbm [shape: f32[1,32], index: 15, kind: input, shape index: {}]   ;;  %s3342_s16 = inlined_call_operand.hbm [shape: f32[1,32], index: 16, kind: input, shape index: {}]   ;;  %s3343_s17 = inlined_call_operand.hbm [shape: f32[1,32], index: 17, kind: input, shape index: {}]   ;;  %s3344_s18 = inlined_call_operand.vmem [shape: bf16[32,32], index: 18, kind: input, shape index: {}]   ;;  %s3345_s19 = inlined_call_operand.vmem [shape: f32[1,32], index: 19, kind: input, shape index: {}]   ;;  %s3346_s20 = inlined_call_operand.vmem [shape: bf16[32,128], index: 20, kind: input, shape index: {}]   ;;  %s3347_s21 = inlined_call_operand.vmem [shape: f32[1,128], index: 21, kind: input, shape index: {}]   ;;  %s3348_s22 = inlined_call_operand.hbm [shape: f32[2,1,128], index: 22, kind: output, shape index: {}]  }
   0x1   :  { %3368 = sst [smem:[#allocation33_spill]] %s3326_s0 }
   0x2   :  { %3369 = sst [smem:[#allocation34_spill]] %s3327_s1 }
   0x3   :  { %3370 = sst [smem:[#allocation35_spill]] %s3328_s2 }
   0x4   :  { %3371 = sst [smem:[#allocation36_spill]] %s3329_s3 }
   0x5   :  { %3372 = sst [smem:[#allocation37_spill]] %s3330_s4 }
   0x6   :  { %3373 = sst [smem:[#allocation38_spill]] %s3331_s5 }
   0x7   :  { %3374 = sst [smem:[#allocation39_spill]] %s3332_s6 }
   0x8   :  { %3375 = sst [smem:[#allocation40_spill]] %s3333_s7 }
   0x9   :  { %3376 = sst [smem:[#allocation41_spill]] %s3334_s8 }
   0xa   :  { %3377 = sst [smem:[#allocation42_spill]] %s3335_s9 }
   0xb   :  { %3378 = sst [smem:[#allocation43_spill]] %s3336_s10 }
   0xc   :  { %3379 = sst [smem:[#allocation44_spill]] %s3338_s12 }
   0xd   :  { %3380 = sst [smem:[#allocation45_spill]] %s3340_s14 }
   0xe   :  { %3381 = sst [smem:[#allocation46_spill]] %s3344_s18 }
   0xf   :  { %3382 = sst [smem:[#allocation47_spill]] %s3345_s19 }
  0x10   :  { %3383 = sst [smem:[#allocation48_spill]] %s3346_s20 }
  0x11   :  { %3384 = sst [smem:[#allocation49_spill]] %s3347_s21 }
  0x12   :  { %3385 = sst [smem:[#allocation50_spill]] %s3348_s22 }
  0x13   :  { %27 = vsyncpa [#allocation3], 0 }
  0x14   :  { %29 = vsyncpa [#allocation3 + $0x1], 0 }
  0x15   :  { %30 = vsyncpa [#allocation6], 0 }
  0x16   :  { %31 = vsyncpa [#allocation9], 0 }
  0x17   :  { %32 = vsyncpa [#allocation12], 0 }
  0x18   :  { %33 = vsyncpa [#allocation15], 0 }
  0x19   :  { %34 = vsyncpa [#allocation18], 0 }
  0x1a   :  { %35 = vsyncpa [#allocation21], 0 }
  0x1b   :  { %36 = vsyncpa [#allocation4], 0 }
  0x1c   :  { %38 = vsyncpa [#allocation4 + $0x1], 0  ;;  %s2768_s3 = smov 0   ;;  %s2770_s28 = smov 0  }
  0x1d   :  { %s2772_s29 = smov 0   ;;  %s2774_s30 = smov 0  }
  0x1e LB: > { %s2635_s4 = smov [#allocation5]   ;;  %s2789_s23 = sadd.s32 4294967295, %s2633_s30   ;;  %s2633_s30 = sphi %s2774_s30, %s3435_s30   ;;  %s2629_s29 = sphi %s2772_s29, %s3434_s29   ;;  %s2625_s28 = sphi %s2770_s28, %s3433_s28   ;;  %s2621_s3 = sphi %s2768_s3, %s3432_s3  }
  0x1f   : > { %s563_s0 = sshll.u32 %s2635_s4, 4  ;;  %p1795_p0 = scmp.ge.s32.totalorder %s2633_s30, 1  ;;  %s2794_s0 = int_to_ptr.vmem [resolvable:$true] %s563_s0 }
  0x20   : > { %p3363_p1 = scmp.eq.s32.totalorder %s2789_s23, 0  ;;  %p547_p2 = scmp.lt.s32.totalorder %s2633_s30, 3 }
  0x21   : > { %s2636_s5 = smov [#allocation8]   ;;  %s2637_s25 = smov [#allocation11]  }
  0x22   : > { %p2796_p3 = pnand %p1795_p0, %p547_p2  ;;  %s587_s24 = sshll.u32 %s2636_s5, 4  ;;  %s2803_s24 = int_to_ptr.vmem [resolvable:$true] %s587_s24 }
  0x23   : > { %s611_s26 = sshll.u32 %s2637_s25, 4  ;;  %s3389_s4 = sld [smem:[#allocation36_spill]]  ;;  %s2811_s26 = int_to_ptr.vmem [resolvable:$true] %s611_s26 }
  0x24   : > { %s3386_s1 = scalar_select %p2796_p3, 1, 0 }
  0x25   : > { %p2028_p5 = pneg %p2796_p3 }
  0x26   : > { %3387 = sst [smem:[#allocation32_spill]] %s3386_s1 }
  0x27   : > { %p2807_p6 = pnand %p2028_p5, %p3363_p1 }
  0x29   : > { %s2177_s22 = scalar_lea.hbm %s3389_s4, 16  ;;  %p2821_p8 = pneg %p2807_p6 }
  0x2a   : > { %p2178_p7 = scmp.ne.s32.totalorder %s3389_s4, %s2177_s22  ;;  %p2184_p11 = scmp.lt.u32.totalorder %s2177_s22, %s3389_s4 }
  0x2c   : > { %p2180_p9 = pnand %p2821_p8, %p2178_p7 }
  0x2e   : > { %p2181_p10 = pneg %p2180_p9 }
  0x30   : > { %p2186_p12 = pnand %p2184_p11, %p2181_p10 }
  0x32   : > { %2189 = shalt.err (!%p2186_p12)
}
  0x33   : > { %s2190_s19 = scalar_lea.vmem %s2794_s0, 16  ;;  %s2197_s21 = scalar_lea.vmem %s2794_s0, 32 }
  0x34   : > { %p2191_p13 = scmp.ne.s32.totalorder %s2794_s0, %s2190_s19  ;;  %p2198_p5 = scmp.lt.s32.totalorder %s2794_s0, %s2794_s0 }
  0x35   : > { %p2199_p7 = scmp.lt.s32.totalorder %s2197_s21, %s2190_s19 }
  0x36   : > { %p2193_p0 = pnand %p2191_p13, %p2821_p8 }
  0x37   : > { %p2200_p9 = por %p2199_p7, %p2198_p5 }
  0x38   : > { %p2194_p2 = pneg %p2193_p0 }
  0x3a   : > { %p2201_p4 = pnand %p2200_p9, %p2194_p2 }
  0x3c   : > { %2204 = shalt.err (!%p2201_p4)
}
  0x3d   : > { %2031 = dma.hbm_to_vmem [thread:$0]  (!%p2807_p6), %s3389_s4, 16, %s2794_s0, [#allocation6]  }
  0x3e   : > { %s3391_s25 = sld [smem:[#allocation39_spill]] }
  0x44   : > { %s2205_s18 = scalar_lea.hbm %s3391_s25, 256 }
  0x45   : > { %p2206_p10 = scmp.ne.s32.totalorder %s3391_s25, %s2205_s18  ;;  %p2212_p4 = scmp.lt.u32.totalorder %s2205_s18, %s3391_s25 }
  0x47   : > { %p2208_p11 = pnand %p2206_p10, %p2821_p8 }
  0x49   : > { %p2209_p12 = pneg %p2208_p11 }
  0x4b   : > { %p2214_p13 = pnand %p2212_p4, %p2209_p12 }
  0x4d   : > { %2217 = shalt.err (!%p2214_p13)
}
  0x4e   : > { %s2218_s0 = scalar_lea.vmem %s2803_s24, 256  ;;  %p2226_p7 = scmp.lt.s32.totalorder %s2803_s24, %s2803_s24 }
  0x4f   : > { %p2219_p0 = scmp.ne.s32.totalorder %s2803_s24, %s2218_s0  ;;  %p2227_p9 = scmp.lt.s32.totalorder %s2218_s0, %s2218_s0 }
  0x51   : > { %p2221_p2 = pnand %p2219_p0, %p2821_p8  ;;  %p2228_p10 = por %p2227_p9, %p2226_p7 }
  0x53   : > { %p2222_p5 = pneg %p2221_p2 }
  0x55   : > { %p2229_p11 = pnand %p2228_p10, %p2222_p5 }
  0x57   : > { %2232 = shalt.err (!%p2229_p11)
}
  0x58   : > { %s2638_s12 = smov 64   ;;  %s2639_s14 = smov 4  }
  0x59   : > { %2037 = dma.hbm_to_vmem [thread:$0]  (!%p2807_p6), %s3391_s25, 256, %s2803_s24, [#allocation9], %s2638_s12, %s2638_s12, %s2639_s14  }
  0x5a   : > { %s3392_s8 = sld [smem:[#allocation41_spill]] }
  0x60   : > { %s2233_s27 = scalar_lea.hbm %s3392_s8, 256 }
  0x61   : > { %p2234_p12 = scmp.ne.s32.totalorder %s3392_s8, %s2233_s27  ;;  %p2240_p0 = scmp.lt.u32.totalorder %s2233_s27, %s3392_s8 }
  0x63   : > { %p2236_p4 = pnand %p2234_p12, %p2821_p8 }
  0x65   : > { %p2237_p13 = pneg %p2236_p4 }
  0x67   : > { %p2242_p2 = pnand %p2240_p0, %p2237_p13 }
  0x69   : > { %2245 = shalt.err (!%p2242_p2)
}
  0x6a   : > { %s2246_s24 = scalar_lea.vmem %s2811_s26, 256  ;;  %p2254_p10 = scmp.lt.s32.totalorder %s2811_s26, %s2811_s26 }
  0x6b   : > { %p2247_p5 = scmp.ne.s32.totalorder %s2811_s26, %s2246_s24  ;;  %p2255_p11 = scmp.lt.s32.totalorder %s2246_s24, %s2246_s24 }
  0x6d   : > { %p2249_p7 = pnand %p2247_p5, %p2821_p8  ;;  %p2256_p12 = por %p2255_p11, %p2254_p10 }
  0x6f   : > { %p2250_p9 = pneg %p2249_p7 }
  0x71   : > { %p2257_p4 = pnand %p2256_p12, %p2250_p9 }
  0x73   : > { %2260 = shalt.err (!%p2257_p4)
}
  0x74   : > { %2043 = dma.hbm_to_vmem [thread:$0]  (!%p2807_p6), %s3392_s8, 256, %s2811_s26, [#allocation12], %s2638_s12, %s2638_s12, %s2639_s14  }
  0x75   : > { %s2640_s20 = smov [#allocation14]   ;;  %s2641_s2 = smov [#allocation17]  }
  0x76   : > { %s636_s22 = sshll.u32 %s2640_s20, 4  ;;  %s661_s27 = sshll.u32 %s2641_s2, 4  ;;  %s637_s22 = int_to_ptr.vmem [resolvable:$true] %s636_s22  ;;  %s662_s27 = int_to_ptr.vmem [resolvable:$true] %s661_s27 }
  0x77   : > { %s3393_s10 = sld [smem:[#allocation43_spill]] }
  0x7d   : > { %s2261_s0 = scalar_lea.hbm %s3393_s10, 16 }
  0x7e   : > { %p2262_p13 = scmp.ne.s32.totalorder %s3393_s10, %s2261_s0  ;;  %p2268_p5 = scmp.lt.u32.totalorder %s2261_s0, %s3393_s10 }
  0x80   : > { %p2264_p0 = pnand %p2262_p13, %p2821_p8 }
  0x82   : > { %p2265_p2 = pneg %p2264_p0 }
  0x84   : > { %p2270_p7 = pnand %p2268_p5, %p2265_p2 }
  0x86   : > { %2273 = shalt.err (!%p2270_p7)
}
  0x87   : > { %s2274_s26 = scalar_lea.vmem %s637_s22, 16  ;;  %s2281_s12 = scalar_lea.vmem %s637_s22, 32 }
  0x88   : > { %p2275_p9 = scmp.ne.s32.totalorder %s637_s22, %s2274_s26  ;;  %p2282_p12 = scmp.lt.s32.totalorder %s637_s22, %s637_s22 }
  0x89   : > { %p2283_p4 = scmp.lt.s32.totalorder %s2281_s12, %s2274_s26 }
  0x8a   : > { %p2277_p10 = pnand %p2275_p9, %p2821_p8 }
  0x8b   : > { %p2284_p1 = por %p2283_p4, %p2282_p12 }
  0x8c   : > { %p2278_p11 = pneg %p2277_p10 }
  0x8e   : > { %p2285_p3 = pnand %p2284_p1, %p2278_p11 }
  0x90   : > { %2288 = shalt.err (!%p2285_p3)
}
  0x91   : > { %2049 = dma.hbm_to_vmem [thread:$0]  (!%p2807_p6), %s3393_s10, 16, %s637_s22, [#allocation15]  }
  0x92   : > { %s2289_s20 = scalar_lea.hbm %s3339_s13, 16 }
  0x93   : > { %p2290_p13 = scmp.ne.s32.totalorder %s3339_s13, %s2289_s20  ;;  %p2296_p3 = scmp.lt.u32.totalorder %s2289_s20, %s3339_s13 }
  0x95   : > { %p2292_p0 = pnand %p2290_p13, %p2821_p8 }
  0x97   : > { %p2293_p1 = pneg %p2292_p0 }
  0x99   : > { %p2298_p2 = pnand %p2296_p3, %p2293_p1 }
  0x9b   : > { %2301 = shalt.err (!%p2298_p2)
}
  0x9c   : > { %s2302_s24 = scalar_lea.vmem %s662_s27, 16  ;;  %s2309_s22 = scalar_lea.vmem %s662_s27, 32 }
  0x9d   : > { %p2303_p5 = scmp.ne.s32.totalorder %s662_s27, %s2302_s24  ;;  %p2310_p10 = scmp.lt.s32.totalorder %s662_s27, %s662_s27 }
  0x9e   : > { %p2311_p11 = scmp.lt.s32.totalorder %s2309_s22, %s2302_s24 }
  0x9f   : > { %p2305_p7 = pnand %p2303_p5, %p2821_p8 }
  0xa0   : > { %p2312_p12 = por %p2311_p11, %p2310_p10 }
  0xa1   : > { %p2306_p9 = pneg %p2305_p7 }
  0xa3   : > { %p2313_p4 = pnand %p2312_p12, %p2306_p9 }
  0xa5   : > { %2316 = shalt.err (!%p2313_p4)
}
  0xa6   : > { %2055 = dma.hbm_to_vmem [thread:$0]  (!%p2807_p6), %s3339_s13, 16, %s662_s27, [#allocation18]  }
  0xa7   : > { %s2642_s12 = smov [#allocation20]   ;;  %s2643_s14 = smov [#allocation7]  }
  0xa8   : > { %s686_s25 = sshll.u32 %s2642_s12, 4  ;;  %s577_s1 = sshll.u32 %s2643_s14, 4  ;;  %s687_s25 = int_to_ptr.vmem [resolvable:$true] %s686_s25  ;;  %s578_s1 = int_to_ptr.vmem [resolvable:$true] %s577_s1 }
  0xa9   : > { %s2317_s2 = scalar_lea.hbm %s3342_s16, 16 }
  0xaa   : > { %p2318_p13 = scmp.ne.s32.totalorder %s3342_s16, %s2317_s2  ;;  %p2324_p3 = scmp.lt.u32.totalorder %s2317_s2, %s3342_s16 }
  0xac   : > { %p2320_p0 = pnand %p2318_p13, %p2821_p8 }
  0xae   : > { %p2321_p1 = pneg %p2320_p0 }
  0xb0   : > { %p2326_p2 = pnand %p2324_p3, %p2321_p1 }
  0xb2   : > { %2329 = shalt.err (!%p2326_p2)
}
  0xb3   : > { %s2330_s27 = scalar_lea.vmem %s687_s25, 16  ;;  %s2337_s22 = scalar_lea.vmem %s687_s25, 32 }
  0xb4   : > { %p2331_p5 = scmp.ne.s32.totalorder %s687_s25, %s2330_s27  ;;  %p2338_p10 = scmp.lt.s32.totalorder %s687_s25, %s687_s25 }
  0xb5   : > { %p2339_p11 = scmp.lt.s32.totalorder %s2337_s22, %s2330_s27 }
  0xb6   : > { %p2333_p7 = pnand %p2331_p5, %p2821_p8 }
  0xb7   : > { %p2340_p12 = por %p2339_p11, %p2338_p10 }
  0xb8   : > { %p2334_p9 = pneg %p2333_p7 }
  0xba   : > { %p2341_p4 = pnand %p2340_p12, %p2334_p9 }
  0xbc   : > { %2344 = shalt.err (!%p2341_p4)
}
  0xbd   : > { %2061 = dma.hbm_to_vmem [thread:$0]  (!%p2807_p6), %s3342_s16, 16, %s687_s25, [#allocation21]  }
  0xbe   : > { %s3394_s18 = sld [smem:[#allocation38_spill]] }
  0xc4   : > { %s2345_s20 = scalar_lea.hbm %s3394_s18, 16 }
  0xc5   : > { %p2346_p13 = scmp.ne.s32.totalorder %s3394_s18, %s2345_s20  ;;  %p2352_p3 = scmp.lt.u32.totalorder %s2345_s20, %s3394_s18 }
  0xc7   : > { %p2348_p0 = pnand %p2346_p13, %p2821_p8 }
  0xc9   : > { %p2349_p1 = pneg %p2348_p0 }
  0xcb   : > { %p2354_p2 = pnand %p2352_p3, %p2349_p1 }
  0xcd   : > { %2357 = shalt.err (!%p2354_p2)
}
  0xce   : > { %s2358_s24 = scalar_lea.vmem %s578_s1, 16  ;;  %s2365_s25 = scalar_lea.vmem %s578_s1, 32 }
  0xcf   : > { %p2359_p5 = scmp.ne.s32.totalorder %s578_s1, %s2358_s24  ;;  %p2366_p10 = scmp.lt.s32.totalorder %s578_s1, %s578_s1 }
  0xd0   : > { %p2367_p11 = scmp.lt.s32.totalorder %s2365_s25, %s2358_s24 }
  0xd1   : > { %p2361_p7 = pnand %p2359_p5, %p2821_p8 }
  0xd2   : > { %p2368_p12 = por %p2367_p11, %p2366_p10 }
  0xd3   : > { %p2362_p9 = pneg %p2361_p7 }
  0xd5   : > { %p2369_p4 = pnand %p2368_p12, %p2362_p9 }
  0xd7   : > { %2372 = shalt.err (!%p2369_p4)
}
  0xd8   : > { %2034 = dma.hbm_to_vmem [thread:$0]  (!%p2807_p6), %s3394_s18, 16, %s578_s1, [#allocation6]  }
  0xd9   : > { %s2644_s4 = smov [#allocation10]   ;;  %s2645_s12 = smov [#allocation13]  }
  0xda   : > { %s601_s26 = sshll.u32 %s2644_s4, 4  ;;  %s625_s14 = sshll.u32 %s2645_s12, 4  ;;  %s602_s26 = int_to_ptr.vmem [resolvable:$true] %s601_s26  ;;  %s626_s14 = int_to_ptr.vmem [resolvable:$true] %s625_s14 }
  0xdb   : > { %s3395_s7 = sld [smem:[#allocation40_spill]] }
  0xe1   : > { %s2373_s19 = scalar_lea.hbm %s3395_s7, 16 }
  0xe2   : > { %p2374_p13 = scmp.ne.s32.totalorder %s3395_s7, %s2373_s19  ;;  %p2380_p3 = scmp.lt.u32.totalorder %s2373_s19, %s3395_s7 }
  0xe4   : > { %p2376_p0 = pnand %p2374_p13, %p2821_p8 }
  0xe6   : > { %p2377_p1 = pneg %p2376_p0 }
  0xe8   : > { %p2382_p2 = pnand %p2380_p3, %p2377_p1 }
  0xea   : > { %2385 = shalt.err (!%p2382_p2)
}
  0xeb   : > { %s2386_s1 = scalar_lea.vmem %s602_s26, 16  ;;  %s2393_s27 = scalar_lea.vmem %s602_s26, 32 }
  0xec   : > { %p2387_p5 = scmp.ne.s32.totalorder %s602_s26, %s2386_s1  ;;  %p2394_p10 = scmp.lt.s32.totalorder %s602_s26, %s602_s26 }
  0xed   : > { %p2395_p11 = scmp.lt.s32.totalorder %s2393_s27, %s2386_s1 }
  0xee   : > { %p2389_p7 = pnand %p2387_p5, %p2821_p8 }
  0xef   : > { %p2396_p12 = por %p2395_p11, %p2394_p10 }
  0xf0   : > { %p2390_p9 = pneg %p2389_p7 }
  0xf2   : > { %p2397_p4 = pnand %p2396_p12, %p2390_p9 }
  0xf4   : > { %2400 = shalt.err (!%p2397_p4)
}
  0xf5   : > { %2040 = dma.hbm_to_vmem [thread:$0]  (!%p2807_p6), %s3395_s7, 16, %s602_s26, [#allocation9]  }
  0xf6   : > { %s3396_s9 = sld [smem:[#allocation42_spill]] }
  0xfc   : > { %s2401_s2 = scalar_lea.hbm %s3396_s9, 16 }
  0xfd   : > { %p2402_p13 = scmp.ne.s32.totalorder %s3396_s9, %s2401_s2  ;;  %p2408_p3 = scmp.lt.u32.totalorder %s2401_s2, %s3396_s9 }
  0xff   : > { %p2404_p0 = pnand %p2402_p13, %p2821_p8 }
 0x101   : > { %p2405_p1 = pneg %p2404_p0 }
 0x103   : > { %p2410_p2 = pnand %p2408_p3, %p2405_p1 }
 0x105   : > { %2413 = shalt.err (!%p2410_p2)
}
 0x106   : > { %s2414_s25 = scalar_lea.vmem %s626_s14, 16  ;;  %s2421_s26 = scalar_lea.vmem %s626_s14, 32 }
 0x107   : > { %p2415_p5 = scmp.ne.s32.totalorder %s626_s14, %s2414_s25  ;;  %p2422_p10 = scmp.lt.s32.totalorder %s626_s14, %s626_s14 }
 0x108   : > { %p2423_p11 = scmp.lt.s32.totalorder %s2421_s26, %s2414_s25 }
 0x109   : > { %p2417_p7 = pnand %p2415_p5, %p2821_p8 }
 0x10a   : > { %p2424_p12 = por %p2423_p11, %p2422_p10 }
 0x10b   : > { %p2418_p9 = pneg %p2417_p7 }
 0x10d   : > { %p2425_p4 = pnand %p2424_p12, %p2418_p9 }
 0x10f   : > { %2428 = shalt.err (!%p2425_p4)
}
 0x110   : > { %2046 = dma.hbm_to_vmem [thread:$0]  (!%p2807_p6), %s3396_s9, 16, %s626_s14, [#allocation12]  }
 0x111   : > { %s2646_s22 = smov [#allocation16]   ;;  %s2647_s12 = smov [#allocation19]  }
 0x112   : > { %s647_s4 = sshll.u32 %s2646_s22, 4  ;;  %s675_s20 = sshll.u32 %s2647_s12, 4  ;;  %s648_s4 = int_to_ptr.vmem [resolvable:$true] %s647_s4  ;;  %s676_s20 = int_to_ptr.vmem [resolvable:$true] %s675_s20 }
 0x113   : > { %s2429_s21 = scalar_lea.hbm %s3337_s11, 16 }
 0x114   : > { %p2430_p13 = scmp.ne.s32.totalorder %s3337_s11, %s2429_s21  ;;  %p2436_p3 = scmp.lt.u32.totalorder %s2429_s21, %s3337_s11 }
 0x116   : > { %p2432_p0 = pnand %p2430_p13, %p2821_p8 }
 0x118   : > { %p2433_p1 = pneg %p2432_p0 }
 0x11a   : > { %p2438_p2 = pnand %p2436_p3, %p2433_p1 }
 0x11c   : > { %2441 = shalt.err (!%p2438_p2)
}
 0x11d   : > { %s2442_s14 = scalar_lea.vmem %s648_s4, 16  ;;  %s2449_s1 = scalar_lea.vmem %s648_s4, 32 }
 0x11e   : > { %p2443_p5 = scmp.ne.s32.totalorder %s648_s4, %s2442_s14  ;;  %p2450_p10 = scmp.lt.s32.totalorder %s648_s4, %s648_s4 }
 0x11f   : > { %p2451_p11 = scmp.lt.s32.totalorder %s2449_s1, %s2442_s14 }
 0x120   : > { %p2445_p7 = pnand %p2443_p5, %p2821_p8 }
 0x121   : > { %p2452_p12 = por %p2451_p11, %p2450_p10 }
 0x122   : > { %p2446_p9 = pneg %p2445_p7 }
 0x124   : > { %p2453_p4 = pnand %p2452_p12, %p2446_p9 }
 0x126   : > { %2456 = shalt.err (!%p2453_p4)
}
 0x127   : > { %2052 = dma.hbm_to_vmem [thread:$0]  (!%p2807_p6), %s3337_s11, 16, %s648_s4, [#allocation15]  }
 0x128   : > { %s2457_s19 = scalar_lea.hbm %s3341_s15, 16 }
 0x129   : > { %p2458_p13 = scmp.ne.s32.totalorder %s3341_s15, %s2457_s19  ;;  %p2464_p3 = scmp.lt.u32.totalorder %s2457_s19, %s3341_s15 }
 0x12b   : > { %p2460_p0 = pnand %p2458_p13, %p2821_p8 }
 0x12d   : > { %p2461_p1 = pneg %p2460_p0 }
 0x12f   : > { %p2466_p2 = pnand %p2464_p3, %p2461_p1 }
 0x131   : > { %2469 = shalt.err (!%p2466_p2)
}
 0x132   : > { %s2470_s26 = scalar_lea.vmem %s676_s20, 16  ;;  %s2477_s4 = scalar_lea.vmem %s676_s20, 32 }
 0x133   : > { %p2471_p5 = scmp.ne.s32.totalorder %s676_s20, %s2470_s26  ;;  %p2478_p10 = scmp.lt.s32.totalorder %s676_s20, %s676_s20 }
 0x134   : > { %p2479_p11 = scmp.lt.s32.totalorder %s2477_s4, %s2470_s26 }
 0x135   : > { %p2473_p7 = pnand %p2471_p5, %p2821_p8 }
 0x136   : > { %p2480_p12 = por %p2479_p11, %p2478_p10 }
 0x137   : > { %p2474_p9 = pneg %p2473_p7 }
 0x139   : > { %p2481_p4 = pnand %p2480_p12, %p2474_p9 }
 0x13b   : > { %2484 = shalt.err (!%p2481_p4)
}
 0x13c   : > { %2058 = dma.hbm_to_vmem [thread:$0]  (!%p2807_p6), %s3341_s15, 16, %s676_s20, [#allocation18]  }
 0x13d   : > { %s2648_s27 = smov [#allocation22]   ;;  %s2485_s19 = scalar_lea.hbm %s3343_s17, 16 }
 0x13e   : > { %s697_s22 = sshll.u32 %s2648_s27, 4  ;;  %p2486_p13 = scmp.ne.s32.totalorder %s3343_s17, %s2485_s19  ;;  %s698_s22 = int_to_ptr.vmem [resolvable:$true] %s697_s22 }
 0x13f   : > { %p2492_p3 = scmp.lt.u32.totalorder %s2485_s19, %s3343_s17 }
 0x140   : > { %p2488_p0 = pnand %p2486_p13, %p2821_p8 }
 0x142   : > { %p2489_p1 = pneg %p2488_p0 }
 0x144   : > { %p2494_p2 = pnand %p2492_p3, %p2489_p1 }
 0x146   : > { %2497 = shalt.err (!%p2494_p2)
}
 0x147   : > { %s2498_s20 = scalar_lea.vmem %s698_s22, 16  ;;  %s2505_s26 = scalar_lea.vmem %s698_s22, 32 }
 0x148   : > { %p2499_p5 = scmp.ne.s32.totalorder %s698_s22, %s2498_s20  ;;  %p2506_p10 = scmp.lt.s32.totalorder %s698_s22, %s698_s22 }
 0x149   : > { %p2507_p11 = scmp.lt.s32.totalorder %s2505_s26, %s2498_s20 }
 0x14a   : > { %p2501_p7 = pnand %p2499_p5, %p2821_p8 }
 0x14b   : > { %p2508_p12 = por %p2507_p11, %p2506_p10 }
 0x14c   : > { %p2502_p9 = pneg %p2501_p7 }
 0x14e   : > { %p2509_p4 = pnand %p2508_p12, %p2502_p9 }
 0x150   : > { %2512 = shalt.err (!%p2509_p4)
}
 0x151   : > { %2064 = dma.hbm_to_vmem [thread:$0]  (!%p2807_p6), %s3343_s17, 16, %s698_s22, [#allocation21]  }
 0x152   : > { %s1794_s5 = sadd.s32 4294967294, %s2633_s30   ;;  %s3053_s6 = sadd.s32 1, %s2633_s30  }
 0x153   : > { %s74_s1 = ssub.s32 %s2633_s30, %s3053_s6  ;;  %s77_s27 = sadd.s32 1, %s2629_s29 }
 0x154   : > { %p75_p8 = scmp.eq.s32.totalorder %s74_s1, 0  ;;  %p84_p13 = scmp.ne.s32.totalorder %s2629_s29, %s2625_s28 }
 0x155   : > { %p85_p0 = scmp.eq.s32.totalorder %s2633_s30, 0  ;;  %p90_p1 = scmp.ne.s32.totalorder %s2625_s28, %s2621_s3 }
 0x156   : > { %s3064_s12 = scalar_select %p75_p8, %s2629_s29, %s77_s27  }
 0x157   : > { %p3066_p3 = por %p85_p0, %p84_p13  ;;  %p3398_p2 = scmp.eq.s32.totalorder %s2789_s23, 0 }
 0x158   : > { %p534_p5 = scmp.eq.s32.totalorder %s2789_s23, 1  ;;  %p540_p7 = scmp.eq.s32.totalorder %s1794_s5, 1 }
 0x159   : > { %p3072_p6 = por %p3398_p2, %p90_p1  ;;  %p2085_p9 = scmp.lt.s32.totalorder %s2633_s30, 2 }
 0x15a   : > { %s727_s19 = sand.u32 1, %s2629_s29   ;;  %p3079_p10 = por %p534_p5, %p84_p13 }
 0x15b   : > { %p3083_p11 = por %p540_p7, %p90_p1  ;;  %s1809_s24 = sshll.u32 %s2633_s30, 4 }
 0x15c   : > { %s3400_s21 = scalar_select %p3079_p10, 1, 0 }
 0x15d   : > { %s3401_s0 = scalar_select %p3083_p11, 1, 0 }
 0x15e   : > { %s730_s25 = scalar_lea.vmem [#allocation2], %s727_s19  ;;  %s3402_s14 = sld [smem:[#allocation34_spill]] }
 0x15f   : > { %s737_s20 = sshll.u32 %s730_s25, 4  ;;  %p3097_p12 = pnand %p2085_p9, %p3066_p3  ;;  %s3093_s20 = int_to_ptr.vmem [resolvable:$true] %s737_s20 }
 0x160   : > { %s728_s27 = scalar_lea.sflag [#allocation3], %s727_s19 }
 0x161   : > { %p2515_p8 = pneg %p3097_p12 }
 0x164   : > { %s3091_s1 = scalar_lea.hbm %s3402_s14, %s1809_s24  ;;  %s2518_s4 = scalar_lea.hbm %s3402_s14, 32 }
 0x165   : > { %s2513_s25 = scalar_lea.hbm %s3091_s1, 16  ;;  %p2519_p1 = scmp.lt.u32.totalorder %s3091_s1, %s3402_s14 }
 0x166   : > { %p2514_p4 = scmp.ne.s32.totalorder %s3091_s1, %s2513_s25  ;;  %p2520_p3 = scmp.lt.u32.totalorder %s2518_s4, %s2513_s25 }
 0x167   : > { %p2522_p5 = scmp.lt.u32.totalorder %s2513_s25, %s3091_s1 }
 0x168   : > { %p2516_p13 = pnand %p2515_p8, %p2514_p4  ;;  %p2521_p2 = por %p2520_p3, %p2519_p1 }
 0x16a   : > { %p2517_p0 = pneg %p2516_p13  ;;  %p2523_p7 = por %p2522_p5, %p2521_p2 }
 0x16c   : > { %p2524_p9 = pnand %p2523_p7, %p2517_p0 }
 0x16e   : > { %2527 = shalt.err (!%p2524_p9)
}
 0x16f   : > { %s2528_s19 = scalar_lea.vmem %s3093_s20, 16  ;;  %s2649_s24 = smov [#allocation2]  }
 0x170   : > { %p2529_p4 = scmp.ne.s32.totalorder %s3093_s20, %s2528_s19  ;;  %s2533_s26 = sshll.u32 %s2649_s24, 4  ;;  %s2534_s26 = int_to_ptr.vmem [resolvable:$false] %s2533_s26 }
 0x171   : > { %s2535_s7 = scalar_lea.vmem %s2534_s26, 32  ;;  %p2536_p10 = scmp.lt.s32.totalorder %s3093_s20, %s2534_s26 }
 0x172   : > { %p2531_p13 = pnand %p2529_p4, %p2515_p8  ;;  %p2537_p1 = scmp.lt.s32.totalorder %s2535_s7, %s2528_s19 }
 0x174   : > { %p2532_p11 = pneg %p2531_p13  ;;  %p2538_p3 = por %p2537_p1, %p2536_p10 }
 0x176   : > { %p2539_p2 = pnand %p2538_p3, %p2532_p11 }
 0x178   : > { %2542 = shalt.err (!%p2539_p2)
}
 0x179   : > { %2068 = dma.hbm_to_vmem [thread:$0]  (!%p3097_p12), %s3091_s1, 16, %s3093_s20, %s728_s27  }
 0x17a   : > { %s3404_s25 = sld [smem:[#allocation32_spill]] }
 0x180   : > { %p3405_p0 = scmp.ne.s32.totalorder %s3404_s25, 0 }
 0x181   : > { %s3129_s4 = sand.u32 (!%p3405_p0), 1, %s2625_s28  }
 0x182   : > { %746 = sbr.rel (%p3405_p0) target bundleno = 3157 (0xc55), region = 108  ;;  %s749_s2 = scalar_lea.sflag (!%p3405_p0), [#allocation3], %s3129_s4 }
 0x189   : > { %2588 = dma.done.wait (%p3072_p6), %s749_s2, 16  }
 0x18a   : > { %2590 = vsyncadd (%p3072_p6), %s749_s2, 4294967280  ;;  %p3406_p10 = scmp.eq.s32.totalorder %s2789_s23, 0 }
 0x18c   : > { %2592 = dma.done.wait (%p3406_p10), [#allocation6], 32   ;;  %p3407_p11 = pmov %p3406_p10 }
 0x18d   : > { %p3408_p12 = pmov %p3406_p10 }
 0x18e   : > { %2594 = vsyncadd (%p3407_p11), [#allocation6], 4294967264 }
 0x18f   : > { %2596 = dma.done.wait (%p3408_p12), [#allocation9], 272   ;;  %p3409_p8 = pmov %p3406_p10 }
 0x191   : > { %2598 = vsyncadd (%p3409_p8), [#allocation9], 4294967024  ;;  %p3410_p5 = pmov %p3409_p8 }
 0x193   : > { %2600 = dma.done.wait (%p3410_p5), [#allocation12], 272   ;;  %p3411_p7 = pmov %p3410_p5 }
 0x194   : > { %p3412_p6 = pmov %p3410_p5 }
 0x195   : > { %2602 = vsyncadd (%p3411_p7), [#allocation12], 4294967024 }
 0x196   : > { %2604 = dma.done.wait (%p3412_p6), [#allocation15], 32   ;;  %p3413_p9 = pmov %p3410_p5 }
 0x197   : > { %p3414_p4 = pmov %p3410_p5 }
 0x198   : > { %2606 = vsyncadd (%p3413_p9), [#allocation15], 4294967264 }
 0x199   : > { %2608 = dma.done.wait (%p3414_p4), [#allocation18], 32   ;;  %p3415_p13 = pmov %p3414_p4 }
 0x19a   : > { %p3416_p1 = pmov %p3414_p4 }
 0x19b   : > { %2610 = vsyncadd (%p3415_p13), [#allocation18], 4294967264 }
 0x19c   : > { %2612 = dma.done.wait (%p3416_p1), [#allocation21], 32   ;;  %p3417_p3 = pmov %p3416_p1 }
 0x19d   : > { %p862_p2 = scmp.lt.s32.totalorder %s2789_s23, 1  ;;  %v2650_v0 = vmov 0.0   ;;  %vm2651_vm0 = vmmov 0   ;;  %s3418_s27 = sld [smem:[#allocation37_spill]]  ;;  %vm892_vm1 = vcmask 261120   ;;  %v2151_v22 = vld [vmem:[#allocation8] sm:$0xff]  }
 0x19e   : > { %2614 = vsyncadd (%p3417_p3), [#allocation21], 4294967264  ;;  %1904 = vmatprep.subr.bf16.mxu1 %v2650_v0  ;;  %1896 = vmatprep.subr.bf16.mxu0 %v2650_v0  ;;  %s3419_s7 = sld [smem:[#allocation33_spill]]  ;;  %s3420_s10 = sld [smem:[#allocation35_spill]]  ;;  %v1828_v7 = vld [vmem:[#allocation7] ss:$0 sm:$0xff] }
 0x19f   : > { %1908 = vmatprep.mubr.msk.bf16.mxu1 %vm2651_vm0, %v2650_v0  ;;  %s863_s22 = scalar_select %p862_p2, %s2789_s23, 1  ;;  %1900 = vmatprep.mubr.msk.bf16.mxu0 %vm2651_vm0, %v2650_v0  ;;  %v1824_v12 = vld [vmem:[#allocation5] ss:$0 sm:$0xff]  ;;  %v2152_v23 = vld [vmem:[#allocation8 + $0x8] sm:$0xff]   ;;  %vm1119_vm2 = vcmask 64512   ;;  %vm1136_vm3 = vcmask 1043456  }
 0x1a0   : > { %s3421_s8 = scalar_lea.vmem [#allocation2], %s3129_s4  ;;  %v1832_v40 = vld [vmem:[#allocation10] ss:$0 sm:$0xff]  ;;  %v2153_v45 = vld [vmem:[#allocation11] sm:$0xff]   ;;  %v2154_v50 = vld [vmem:[#allocation11 + $0x8] sm:$0xff]   ;;  %vm1394_vm4 = vcmask 523264  }
 0x1a1   : > { %s1823_s20 = sshll.u32 %s863_s22, 3  ;;  %v1837_v25 = vld [vmem:[%s3421_s8] ss:$0 sm:$0xff]  ;;  %v1839_v56 = vld [vmem:[#allocation13] ss:$0 sm:$0xff]  ;;  %s3424_s26 = sld [smem:[#allocation46_spill]] }
 0x1a2   : > { %s3425_s8 = sld [smem:[#allocation48_spill]]  ;;  %s3427_s1 = sld [smem:[#allocation49_spill]] }
 0x1a3   : > { %v2147_v1 = vld [vmem:[%s3418_s27] sm:$0xff]   ;;  %v2148_v2 = vld [vmem:[%s3418_s27 + $0x8] sm:$0xff]   ;;  %s1863_s9 = sshll.u32 %s2789_s23, 4  ;;  %s861_s24 = scalar_lea.vmem [#allocation23], %s3129_s4 }
 0x1a4   : > { %s865_s25 = scalar_lea.vmem %s3419_s7, %s1823_s20  ;;  %1905 = vmatpush3.bf16.msra.mxu1 %v2147_v1  ;;  %v2149_v3 = vld [vmem:[%s3420_s10] sm:$0xff]   ;;  %v2150_v5 = vld [vmem:[%s3420_s10 + $0x8] sm:$0xff]   ;;  %s3422_s20 = sld [smem:[#allocation44_spill]] }
 0x1a5   : > { %1906 = vmatprep.subr.bf16.mxu1 %v2650_v0  ;;  %v3182_v4 = vld [vmem:[%s865_s25] sm:$0xff]  ;;  %1897 = vmatpush3.bf16.msra.mxu0 %v2149_v3  ;;  %s3423_s25 = sld [smem:[#allocation45_spill]]  ;;  %s3426_s7 = sld [smem:[#allocation47_spill]] }
 0x1a6   : > { %v868_v6 = vpack.c.bf16 %v3182_v4, %v3182_v4  ;;  %1898 = vmatprep.subr.bf16.mxu0 %v2650_v0  ;;  %s1605_s5 = sshll.u32 %s861_s24, 4  ;;  %s1593_s2 = scalar_lea.sflag [#allocation4], %s3129_s4  ;;  %s3284_s5 = int_to_ptr.vmem [resolvable:$true] %s1605_s5 }
 0x1a7   : > { %s2543_s23 = scalar_lea.vmem %s3284_s5, 16  ;;  %p3429_p10 = scmp.ne.s32.totalorder %s3400_s21, 0 }
 0x1a8   : > { %1907 = vmatpush3.bf16.msra.mxu1 %v2148_v2  ;;  %p2544_p0 = scmp.ne.s32.totalorder %s3284_s5, %s2543_s23  ;;  %s2652_s22 = smov [#allocation23]  }
 0x1a9   : > { %1920 = vmatprep.subr.bf16.mxu1 %v2650_v0  ;;  %1899 = vmatpush3.bf16.msra.mxu0 %v2150_v5 }
 0x1aa   : > { %1912 = vmatprep.subr.bf16.mxu0 %v2650_v0  ;;  %p2545_p11 = pnand %p2544_p0, %p3429_p10 }
 0x1ab   : > { %1909 = vmatmul.mubr.msk.bf16.vlgmr.msra.gmra.mrb[0].mxu1 %vm892_vm1, %v868_v6 }
 0x1ac   : > { %1922 = vmatprep.mubr.msk.bf16.mxu1 %vm2651_vm0, %v2650_v0  ;;  %1901 = vmatmul.mubr.msk.bf16.vlgmr.msra.gmra.mrb[0].mxu0 %vm892_vm1, %v868_v6  ;;  %p2546_p12 = pneg %p2545_p11 }
 0x1ad   : > { %1916 = vmatprep.mubr.msk.bf16.mxu0 %vm2651_vm0, %v2650_v0  ;;  %1913 = vmatpush3.bf16.msra.mxu0 %v2151_v22  ;;  %v1845_v22 = vld [vmem:[#allocation17] ss:$0 sm:$0xff] }
 0x1ae   : > { %1914 = vmatprep.subr.bf16.mxu0 %v2650_v0 }
 0x1b1   : > { %1915 = vmatpush3.bf16.msra.mxu0 %v2152_v23 }
 0x1b2   : > { %1926 = vmatprep.subr.bf16.mxu0 %v2650_v0 }
 0x1b4   : > { %1917 = vmatmul.mubr.msk.bf16.vlgmr.msra.gmra.mrb[4].mxu0 %vm892_vm1, %v868_v6 }
 0x1b5   : > { %1928 = vmatprep.mubr.msk.bf16.mxu0 %vm2651_vm0, %v2650_v0 }
 0x27e   : > { %v993_v8 = vpop.f32.mrb[0].mxu1 }
 0x27f   : > { %v994_v9 = vadd.f32 %v1828_v7, %v993_v8  ;;  %v1910_v10 = vpop.f32.mrb[1].mxu1  ;;  %v930_v13 = vpop.f32.mrb[0].mxu0  ;;  %v2155_v7 = vld [vmem:[%s3422_s20] sm:$0xff]  }
 0x280   : > { %v996_v11 = vpop.f32.mrb[2].mxu1  ;;  %v1902_v16 = vpop.f32.mrb[1].mxu0  ;;  %v931_v19 = vadd.f32 %v1824_v12, %v930_v13  ;;  %v1843_v12 = vld [vmem:[#allocation14] ss:$0 sm:$0xff] }
 0x281   : > { %v1063_v14 = vpack.c.bf16 %v994_v9, %v994_v9  ;;  %v1911_v15 = vpop.f32.mrb[3].mxu1  ;;  %v933_v17 = vpop.f32.mrb[2].mxu0 }
 0x282   : > { %v1903_v20 = vpop.f32.mrb[3].mxu0  ;;  %v1062_v21 = vpack.c.bf16 %v931_v19, %v931_v19  ;;  %v2158_v19 = vld [vmem:[%s3423_s25 + $0x8] sm:$0xff]  }
 0x283   : > { %v1068_v18 = vsel %vm892_vm1, %v1063_v14, 0  ;;  %v1844_v14 = vld [vmem:[#allocation16] ss:$0 sm:$0xff]  ;;  %v2159_v20 = vld [vmem:[%s3423_s25 + $0x10] sm:$0xff]  }
 0x284   : > { %1921 = vmatpush3.bf16.xpose.msra.mxu1 %v1068_v18  ;;  %v2157_v18 = vld [vmem:[%s3423_s25] sm:$0xff]  }
 0x285   : > { %1932 = vmatprep.subr.bf16.mxu1 %v2650_v0 }
 0x287   : > { %v1056_v37 = vpop.f32.mrb[4].mxu0 }
 0x288   : > { %v1918_v38 = vpop.f32.mrb[5].mxu0  ;;  %v1057_v42 = vadd.f32 %v1832_v40, %v1056_v37 }
 0x289   : > { %v1059_v39 = vpop.f32.mrb[6].mxu0  ;;  %v1849_v38 = vld [vmem:[#allocation19] ss:$0 sm:$0xff] }
 0x28a   : > { %v1919_v41 = vpop.f32.mrb[7].mxu0  ;;  %v1132_v43 = vpack.c.bf16 %v1057_v42, %v1057_v42 }
 0x28b   : > { %1923 = vmatmul.mubr.msk.bf16.vlgmr.msra.gmra.mrb[4].mxu1 %vm892_vm1, %v1062_v21  ;;  %v2160_v21 = vld [vmem:[%s3423_s25 + $0x18] sm:$0xff]  }
 0x28c   : > { %1936 = vmatprep.mubr.msk.bf16.mxu1 %vm2651_vm0, %v2650_v0  ;;  %v1138_v44 = vsel %vm1136_vm3, %v1132_v43, 0  ;;  %1933 = vmatpush3.bf16.msra.mxu1 %v2153_v45 }
 0x28d   : > { %1927 = vmatpush3.bf16.msra.mxu0 %v1138_v44  ;;  %1934 = vmatprep.subr.bf16.mxu1 %v2650_v0 }
 0x28e   : > { %1940 = vmatprep.subr.bf16.mxu0 %v2650_v0 }
 0x290   : > { %1935 = vmatpush3.bf16.msra.mxu1 %v2154_v50 }
 0x291   : > { %1948 = vmatprep.subr.bf16.mxu1 %v2650_v0 }
 0x35e   : > { %v1104_v24 = vpop.f32.mrb[4].mxu1 }
 0x35f   : > { %v1110_v26 = vmul.f32 0.17677669, %v1104_v24  ;;  %v1924_v27 = vpop.f32.mrb[5].mxu1 }
 0x360   : > { %v1107_v28 = vpop.f32.mrb[6].mxu1 }
 0x361   : > { %v1925_v29 = vpop.f32.mrb[7].mxu1  ;;  %v1118_v30 = vadd.f32 %v1837_v25, %v1110_v26 }
 0x363   : > { %v1120_v31 = vsel %vm1119_vm2, %v1118_v30, -inf }
 0x364   : > { %1121 = vmax.xlane.f32.xlu0 %v1120_v31 }
 0x3f1   : > { %v1122_v32 = vpop.xlane.xlu0 %1121 }
 0x3f2   : > { %v1123_v33 = vsub.f32 %v1118_v30, %v1122_v32 }
 0x3f4   : > { %v1124_v34 = vmul.f32 1.442695, %v1123_v33 }
 0x3f6   : > { %2165 = vpow2.f32 %v1124_v34 }
 0x400   : > { %v2166_v35 = vpop.eup %2165 }
 0x401   : > { %v1126_v36 = vsel %vm1119_vm2, %v2166_v35, 0.0 }
 0x402   : > { %1127 = vadd.xlane.f32.xlu0 %v1126_v36 }
 0x48f   : > { %v1128_v46 = vpop.xlane.xlu0 %1127 }
 0x490   : > { %2167 = vrcp.f32 %v1128_v46 }
 0x49a   : > { %v2168_v47 = vpop.eup %2167 }
 0x49b   : > { %v1130_v48 = vmul.f32 %v2168_v47, %v2166_v35 }
 0x49d   : > { %v1131_v49 = vpack.c.bf16 %v1130_v48, %v1130_v48 }
 0x49f   : > { %1929 = vmatmul.mubr.msk.bf16.vlgmr.msra.gmra.mrb[8].mxu0 %vm1119_vm2, %v1131_v49 }
 0x4a0   : > { %1944 = vmatprep.mubr.msk.bf16.mxu0 %vm2651_vm0, %v2650_v0  ;;  %1941 = vmatpush3.bf16.msra.mxu0 %v2155_v7 }
 0x4a1   : > { %1942 = vmatprep.subr.bf16.mxu0 %v2650_v0 }
 0x572   : > { %v1174_v51 = vpop.f32.mrb[8].mxu0 }
 0x573   : > { %v1180_v52 = vpack.c.bf16 %v1174_v51, %v1174_v51  ;;  %v1930_v53 = vpop.f32.mrb[9].mxu0  ;;  %v2161_v51 = vld [vmem:[%s3424_s26] sm:$0xff]  }
 0x574   : > { %v1177_v54 = vpop.f32.mrb[10].mxu0 }
 0x575   : > { %v1931_v55 = vpop.f32.mrb[11].mxu0  ;;  %1937 = vmatmul.mubr.msk.bf16.vlgmr.msra.gmra.mrb[8].mxu1 %vm892_vm1, %v1180_v52  ;;  %v2162_v52 = vld [vmem:[%s3424_s26 + $0x8] sm:$0xff]  }
 0x576   : > { %1956 = vmatprep.mubr.msk.bf16.mxu1 %vm2651_vm0, %v2650_v0  ;;  %1949 = vmatpush3.bf16.msra.mxu1 %v2157_v18 }
 0x577   : > { %1950 = vmatprep.subr.bf16.mxu1 %v2650_v0 }
 0x57a   : > { %1951 = vmatpush3.bf16.msra.mxu1 %v2158_v19 }
 0x57b   : > { %1952 = vmatprep.subr.bf16.mxu1 %v2650_v0 }
 0x57e   : > { %1953 = vmatpush3.bf16.msra.mxu1 %v2159_v20 }
 0x57f   : > { %1954 = vmatprep.subr.bf16.mxu1 %v2650_v0 }
 0x582   : > { %1955 = vmatpush3.bf16.msra.mxu1 %v2160_v21 }
 0x648   : > { %v1241_v57 = vpop.f32.mrb[8].mxu1 }
 0x649   : > { %v1242_v58 = vadd.f32 %v1839_v56, %v1241_v57  ;;  %v1938_v59 = vpop.f32.mrb[9].mxu1  ;;  %v1855_v57 = vld [vmem:[#allocation20] ss:$0 sm:$0xff] }
 0x64a   : > { %v1244_v60 = vpop.f32.mrb[10].mxu1  ;;  %v1856_v59 = vld [vmem:[#allocation22] ss:$0 sm:$0xff] }
 0x64b   : > { %v1939_v61 = vpop.f32.mrb[11].mxu1  ;;  %v1247_v62 = vadd.f32 %v1242_v58, %v3182_v4  ;;  %v2156_v4 = vld [vmem:[%s3422_s20 + $0x8] sm:$0xff]  }
 0x64c   : > { %1943 = vmatpush3.bf16.msra.mxu0 %v2156_v4 }
 0x64d   : > { %v1250_v63 = vsel %vm892_vm1, %v1247_v62, 0.0  ;;  %1960 = vmatprep.subr.bf16.mxu0 %v2650_v0 }
 0x64e   : > { %1251 = vadd.xlane.f32.xlu1 %v1250_v63  ;;  %v2163_v63 = vld [vmem:[%s3425_s8] sm:$0xff]  }
 0x6db   : > { %v1252_v1 = vpop.xlane.xlu1 %1251 }
 0x6dc   : > { %v1254_v2 = vmul.f32 0.03125, %v1252_v1  ;;  %v2164_v1 = vld [vmem:[%s3425_s8 + $0x8] sm:$0xff]   ;;  %s3428_s8 = sld [smem:[#allocation50_spill]] }
 0x6de   : > { %v1255_v3 = vsub.f32 %v1247_v62, %v1254_v2  ;;  %v1473_v2 = vld [vmem:[%s3426_s7] sm:$0x1] }
 0x6e0   : > { %v1256_v5 = vmul.f32 %v1255_v3, %v1255_v3 }
 0x6e2   : > { %v1257_v6 = vsel %vm892_vm1, %v1256_v5, 0.0  ;;  %s3282_s10 = scalar_lea.hbm %s3428_s8, %s1863_s9 }
 0x6e3   : > { %1258 = vadd.xlane.f32.xlu1 %v1257_v6 }
 0x770   : > { %v1259_v8 = vpop.xlane.xlu1 %1258 }
 0x771   : > { %v1260_v9 = vmul.f32 0.03125, %v1259_v8 }
 0x773   : > { %v1261_v10 = vadd.f32 1e-12, %v1260_v9 }
 0x775   : > { %2169 = vrsqrt.f32 %v1261_v10 }
 0x77f   : > { %v2170_v11 = vpop.eup %2169 }
 0x780   : > { %v1263_v13 = vmul.f32 %v2170_v11, %v1255_v3 }
 0x782   : > { %v1270_v15 = vmul.f32 %v1843_v12, %v1263_v13 }
 0x784   : > { %v1277_v16 = vadd.f32 %v1844_v14, %v1270_v15 }
 0x786   : > { %v1278_v17 = vpack.c.bf16 %v1277_v16, %v1277_v16 }
 0x788   : > { %1945 = vmatmul.mubr.msk.bf16.vlgmr.msra.gmra.mrb[12].mxu0 %vm892_vm1, %v1278_v17 }
 0x789   : > { %1964 = vmatprep.mubr.msk.bf16.mxu0 %vm2651_vm0, %v2650_v0  ;;  %1961 = vmatpush3.bf16.msra.mxu0 %v2161_v51 }
 0x78a   : > { %1962 = vmatprep.subr.bf16.mxu0 %v2650_v0 }
 0x78d   : > { %1963 = vmatpush3.bf16.msra.mxu0 %v2162_v52 }
 0x78e   : > { %1968 = vmatprep.subr.bf16.mxu0 %v2650_v0 }
 0x85b   : > { %v1339_v23 = vpop.f32.mrb[12].mxu0 }
 0x85c   : > { %v1340_v24 = vadd.f32 %v1845_v22, %v1339_v23  ;;  %v1946_v25 = vpop.f32.mrb[13].mxu0 }
 0x85d   : > { %v1342_v26 = vpop.f32.mrb[14].mxu0 }
 0x85e   : > { %v1345_v27 = vmul.f32 %v1340_v24, %v1340_v24  ;;  %v1947_v28 = vpop.f32.mrb[15].mxu0 }
 0x860   : > { %v1346_v29 = vmul.f32 %v1345_v27, %v1340_v24 }
 0x862   : > { %v1347_v30 = vmul.f32 0.044715, %v1346_v29 }
 0x864   : > { %v1348_v31 = vadd.f32 %v1347_v30, %v1340_v24 }
 0x866   : > { %v1349_v32 = vmul.f32 0.7978846, %v1348_v31 }
 0x868   : > { %2171 = vtanh.f32 %v1349_v32 }
 0x872   : > { %v2172_v33 = vpop.eup %2171 }
 0x873   : > { %v1351_v34 = vadd.f32 1.0, %v2172_v33 }
 0x875   : > { %v1352_v35 = vmul.f32 0.5, %v1351_v34 }
 0x877   : > { %v1353_v36 = vmul.f32 %v1352_v35, %v1340_v24 }
 0x879   : > { %v1354_v37 = vpack.c.bf16 %v1353_v36, %v1353_v36 }
 0x87b   : > { %1957 = vmatmul.mubr.msk.bf16.vlgmr.msra.gmra.mrb[12].mxu1 %vm1394_vm4, %v1354_v37 }
 0x94e   : > { %v1432_v39 = vpop.f32.mrb[12].mxu1 }
 0x94f   : > { %v1433_v40 = vadd.f32 %v1849_v38, %v1432_v39  ;;  %v1958_v41 = vpop.f32.mrb[13].mxu1 }
 0x950   : > { %v1435_v42 = vpop.f32.mrb[14].mxu1 }
 0x951   : > { %v1959_v43 = vpop.f32.mrb[15].mxu1  ;;  %v1438_v44 = vadd.f32 %v1433_v40, %v1277_v16 }
 0x953   : > { %v1441_v45 = vsel %vm892_vm1, %v1438_v44, 0.0 }
 0x954   : > { %1442 = vadd.xlane.f32.xlu0 %v1441_v45 }
 0x9e1   : > { %v1443_v46 = vpop.xlane.xlu0 %1442 }
 0x9e2   : > { %v1444_v47 = vmul.f32 0.03125, %v1443_v46 }
 0x9e4   : > { %v1445_v48 = vsub.f32 %v1438_v44, %v1444_v47 }
 0x9e6   : > { %v1446_v49 = vmul.f32 %v1445_v48, %v1445_v48 }
 0x9e8   : > { %v1447_v50 = vsel %vm892_vm1, %v1446_v49, 0.0 }
 0x9e9   : > { %1448 = vadd.xlane.f32.xlu1 %v1447_v50 }
 0xa76   : > { %v1449_v53 = vpop.xlane.xlu1 %1448 }
 0xa77   : > { %v1450_v54 = vmul.f32 0.03125, %v1449_v53 }
 0xa79   : > { %v1451_v55 = vadd.f32 1e-12, %v1450_v54 }
 0xa7b   : > { %2173 = vrsqrt.f32 %v1451_v55 }
 0xa85   : > { %v2174_v56 = vpop.eup %2173 }
 0xa86   : > { %v1453_v58 = vmul.f32 %v2174_v56, %v1445_v48 }
 0xa88   : > { %v1460_v60 = vmul.f32 %v1855_v57, %v1453_v58 }
 0xa8a   : > { %v1467_v61 = vadd.f32 %v1856_v59, %v1460_v60 }
 0xa8c   : > { %v1468_v62 = vpack.c.bf16 %v1467_v61, %v1467_v61 }
 0xa8e   : > { %1965 = vmatmul.mubr.msk.bf16.vlgmr.msra.gmra.mrb[16].mxu0 %vm892_vm1, %v1468_v62 }
 0xa8f   : > { %1972 = vmatprep.mubr.msk.bf16.mxu0 %vm2651_vm0, %v2650_v0  ;;  %1969 = vmatpush3.bf16.msra.mxu0 %v2163_v63 }
 0xa90   : > { %1970 = vmatprep.subr.bf16.mxu0 %v2650_v0  ;;  %v1535_v0 = vld [vmem:[%s3427_s1] sm:$0x1]  ;;  %s2547_s1 = sshll.u32 %s2652_s22, 4  ;;  %s2548_s1 = int_to_ptr.vmem [resolvable:$false] %s2547_s1 }
 0xa91   : > { %s2549_s19 = scalar_lea.vmem %s2548_s1, 32  ;;  %p2550_p8 = scmp.lt.s32.totalorder %s3284_s5, %s2548_s1 }
 0xa92   : > { %p2551_p5 = scmp.lt.s32.totalorder %s2549_s19, %s2543_s23 }
 0xa93   : > { %1971 = vmatpush3.bf16.msra.mxu0 %v2164_v1 }
 0xa94   : > { %p2552_p7 = por %p2551_p5, %p2550_p8 }
 0xa96   : > { %p2553_p6 = pnand %p2552_p7, %p2546_p12 }
 0xb61   : > { %v1523_v3 = vpop.f32.mrb[16].mxu0 }
 0xb62   : > { %v1524_v5 = vadd.f32 %v1523_v3, %v1473_v2  ;;  %v1966_v6 = vpop.f32.mrb[17].mxu0 }
 0xb63   : > { %v1526_v7 = vpop.f32.mrb[18].mxu0 }
 0xb64   : > { %2175 = vtanh.f32 %v1524_v5  ;;  %v1967_v4 = vpop.f32.mrb[19].mxu0 }
 0xb6e   : > { %v2176_v8 = vpop.eup %2175 }
 0xb6f   : > { %v1530_v9 = vpack.c.bf16 %v2176_v8, %v2176_v8 }
 0xb71   : > { %1973 = vmatmul.mubr.msk.bf16.vlgmr.msra.gmra.mrb[20].mxu0 %vm892_vm1, %v1530_v9 }
 0xc44   : > { %v1585_v10 = vpop.f32.mrb[20].mxu0 }
 0xc45   : > { %v1586_v11 = vadd.f32 %v1585_v10, %v1535_v0  ;;  %v1974_v12 = vpop.f32.mrb[21].mxu0 }
 0xc46   : > { %v1588_v13 = vpop.f32.mrb[22].mxu0 }
 0xc47   : > { %1591 = vst [vmem:[%s861_s24] sm:$0x1] %v1586_v11  ;;  %v1975_v14 = vpop.f32.mrb[23].mxu0 }
 0xc48   : > { %2556 = shalt.err (!%p2553_p6)
}
 0xc49   : > { %s2557_s4 = scalar_lea.hbm %s3282_s10, 16  ;;  %s2561_s7 = scalar_lea.hbm %s3428_s8, 32 }
 0xc4a   : > { %p2558_p9 = scmp.ne.s32.totalorder %s3282_s10, %s2557_s4  ;;  %p2562_p1 = scmp.lt.u32.totalorder %s3282_s10, %s3428_s8 }
 0xc4b   : > { %p2563_p3 = scmp.lt.u32.totalorder %s2561_s7, %s2557_s4  ;;  %p2565_p0 = scmp.lt.u32.totalorder %s2557_s4, %s3282_s10 }
 0xc4c   : > { %p2559_p4 = pnand %p2558_p9, %p3429_p10 }
 0xc4d   : > { %p2564_p2 = por %p2563_p3, %p2562_p1 }
 0xc4e   : > { %p2560_p13 = pneg %p2559_p4 }
 0xc4f   : > { %p2566_p11 = por %p2565_p0, %p2564_p2 }
 0xc51   : > { %p2567_p12 = pnand %p2566_p11, %p2560_p13 }
 0xc53   : > { %2570 = shalt.err (!%p2567_p12)
}
 0xc54   : > { %2026 = dma.vmem_to_hbm [thread:$0]  (%p3429_p10), %s3284_s5, 16, %s3282_s10, %s1593_s2  }
 0xc55 PF: > { %s1617_s23 = sand.u32 1, %s2621_s3   ;;  %p3430_p8 = scmp.ne.s32.totalorder %s3401_s0, 0 }
 0xc56   : > { %p3431_p5 = scmp.ge.s32.totalorder %s2633_s30, 2  ;;  %s1618_s19 = scalar_lea.sflag [#allocation4], %s1617_s23 }
 0xc58   : > { %p2070_p7 = pnand %p3431_p5, %p3430_p8 }
 0xc5a   : > { %2616 = dma.done.wait (!%p2070_p7), %s1618_s19, 16  }
 0xc5b   : > { %2618 = vsyncadd (!%p2070_p7), %s1618_s19, 4294967280  ;;  %p41_p6 = scmp.ge.s32.totalorder %s3053_s6, 4   ;;  %s3432_s3 = smov %s2625_s28 }
 0xc5c   : > { %s3433_s28 = smov %s2629_s29  ;;  %s3434_s29 = smov %s3064_s12 }
 0xc5d   : > { %s3435_s30 = smov %s3053_s6  ;;  %43 = sbr.rel (!%p41_p6) target bundleno = 30 (0x1e), region = 204 }
 0xc64   :  { %1622 = vsyncpa [#allocation3], 1 }
 0xc65   :  { %1624 = vsyncpa [#allocation3 + $0x1], 1 }
 0xc66   :  { %1625 = vsyncpa [#allocation6], 1 }
 0xc67   :  { %1626 = vsyncpa [#allocation9], 1 }
 0xc68   :  { %1627 = vsyncpa [#allocation12], 1 }
 0xc69   :  { %1628 = vsyncpa [#allocation15], 1 }
 0xc6a   :  { %1629 = vsyncpa [#allocation18], 1 }
 0xc6b   :  { %1630 = vsyncpa [#allocation21], 1 }
 0xc6c   :  { %1631 = vsyncpa [#allocation4], 1 }
 0xc6d   :  { %1633 = vsyncpa [#allocation4 + $0x1], 1 }

</bundles_post_ra>
